<compile_context>
chip_gen: v7x
topology: tpu7x:2x2x1
jax: 0.10.0
libtpu: 0.0.40
codegen_flags: <defaults>
</compile_context>

<pallas_src>
import functools

import jax
import jax.numpy as jnp
from jax.experimental import pallas as pl
from jax.experimental.pallas import tpu as pltpu

LANE = 128  # TPU lane width; feature dims padded to this for lane-dense vregs/stores


# ---------------------------------------------------------------------------
# Fused Pallas kernel: L x (GINEConv + folded-BN + act + residual) -> pooled head
# ---------------------------------------------------------------------------

def _gnn_fused_kernel(x_ref, e_ref, S_ref, Dt_ref, M_ref,
                      we_ref, w1_ref, w2_ref, wh_ref, bias_ref,
                      pred_ref,
                      *, num_layer, gin_eps, neg_slope, residual):
    f32, bf16 = jnp.float32, jnp.bfloat16

    x = x_ref[...]                      # [N, DP] f32 (atom emb + PE, done in wrapper)
    S = S_ref[...]                      # [E, N]  bf16 one-hot(src)       -> gather
    Dt = Dt_ref[...]                    # [N, E]  bf16 one-hot(dst)^T     -> scatter-sum

    # Edge projections for ALL layers in one wide MXU op: [E, L*DP].
    # (independent of layer activations, so it is off the serial layer chain)
    e_all = jnp.dot(e_ref[...], we_ref[...], preferred_element_type=f32)

    for l in range(num_layer):          # static unroll (L = 3)
        # per-layer edge term: 128-lane-aligned static slice + bias row
        e_l = e_all[:, l * LANE:(l + 1) * LANE] + bias_ref[3 * l:3 * l + 1, :]

        # gather x[src] per edge: [E,N] @ [N,DP]
        x_src = jnp.dot(S, x.astype(bf16), preferred_element_type=f32)
        msg = jnp.maximum(x_src + e_l, 0.0)            # relu(x_j + e_ij)

        # scatter-sum to destination nodes: [N,E] @ [E,DP]
        aggr = jnp.dot(Dt, msg.astype(bf16), preferred_element_type=f32)

        # GINE update: MLP((1 + eps) * x_i + aggr); eps == 0 -> skip the multiply
        if gin_eps == 0.0:
            z = x + aggr
        else:
            z = (1.0 + gin_eps) * x + aggr
        h = (jnp.dot(z.astype(bf16), w1_ref[l], preferred_element_type=f32)
             + bias_ref[3 * l + 1:3 * l + 2, :])
        h = jnp.maximum(h, 0.0)
        # second Linear with eval-mode BatchNorm folded into weights/bias
        xb = (jnp.dot(h.astype(bf16), w2_ref[l], preferred_element_type=f32)
              + bias_ref[3 * l + 2:3 * l + 3, :])

        # F.dropout is identity in eval; leaky_relu(0.1) on all but the last layer
        if l == num_layer - 1:
            hp = xb
        else:
            hp = jnp.where(xb > 0, xb, neg_slope * xb)

        # Matches the PyTorch source exactly: after `batch.x = norm(...)`, the
        # residual add is `batch.x + h`, i.e. BN-output + activation(BN-output).
        x = (xb + hp) if residual else hp

    # --- prediction head: (mean-pool folded into M) + Linear(dim, out_dim) ------
    pooled = jnp.dot(M_ref[...], x.astype(bf16), preferred_element_type=f32)
    pred_ref[...] = (jnp.dot(pooled.astype(bf16), wh_ref[...],
                             preferred_element_type=f32)
                     + bias_ref[3 * num_layer:3 * num_layer + 1, :])


# ---------------------------------------------------------------------------
# Parameter init (logical shapes, mirrors the PyTorch module)
# ---------------------------------------------------------------------------

def init_params(key, cfg, out_dim):
    dim, bond_dim, pe_dim = cfg["atom_dim"], cfg["bond_dim"], cfg["pe_dim"]
    keys = iter(jax.random.split(key, 8 + 8 * cfg["num_layer"]))

    def lin(kk, fan_in, fan_out):
        bound = fan_in ** -0.5
        return jax.random.uniform(kk, (fan_in, fan_out), jnp.float32, -bound, bound)

    params = {
        "atom_emb": jax.random.normal(next(keys), (21, dim), jnp.float32),
        "bond_emb": jax.random.normal(next(keys), (4, bond_dim), jnp.float32),
        "w_pe": lin(next(keys), pe_dim, dim),
        "b_pe": jnp.zeros((1, dim), jnp.float32),
        "wh": lin(next(keys), dim, out_dim),
        "bh": jnp.zeros((1, out_dim), jnp.float32),
        "layers": [],
    }
    for _ in range(cfg["num_layer"]):
        params["layers"].append({
            "we": lin(next(keys), bond_dim, dim),
            "be": jnp.zeros((1, dim), jnp.float32),
            "w1": lin(next(keys), dim, dim),
            "b1": jnp.zeros((1, dim), jnp.float32),
            "w2": lin(next(keys), dim, dim),
            "b2": jnp.zeros((1, dim), jnp.float32),
            "gamma": jnp.ones((1, dim), jnp.float32),
            "beta": jnp.zeros((1, dim), jnp.float32),
            "rmean": jnp.zeros((1, dim), jnp.float32),
            "rvar": jnp.ones((1, dim), jnp.float32),
        })
    return params


# ---------------------------------------------------------------------------
# One-time preprocessing (hoisted out of the forward path)
# ---------------------------------------------------------------------------

def prepare_params(params, cfg, out_dim, bn_eps=1e-5):
    """Fold eval-mode BN into w2/b2, pad feature dims to 128 lanes, stack / pack
    per-layer weights, cast MXU operands to bf16. Done once; padded channels stay 0."""
    L, DP = cfg["num_layer"], LANE
    bf16 = jnp.bfloat16

    def padc(a):           # pad last (lane) dim of a 2-D array to DP
        return jnp.pad(a, ((0, 0), (0, DP - a.shape[1])))

    def padrc(a):          # pad both dims to DP
        return jnp.pad(a, ((0, DP - a.shape[0]), (0, DP - a.shape[1])))

    def padv(a):           # [1, d] bias -> [DP] lane vector
        return jnp.pad(a.reshape(-1), (0, DP - a.shape[-1]))

    layers = params["layers"]
    we_cat, w1_l, w2_l, bias_rows = [], [], [], []
    for l in range(L):
        p = layers[l]
        # fold eval-mode BatchNorm into the second Linear (on unpadded arrays)
        s = p["gamma"] * jax.lax.rsqrt(p["rvar"] + bn_eps)        # [1, dim]
        w2f = p["w2"] * s                                         # scale columns
        b2f = p["b2"] * s + (p["beta"] - p["rmean"] * s)          # [1, dim]

        we_cat.append(padrc(p["we"]))
        w1_l.append(padrc(p["w1"]))
        w2_l.append(padrc(w2f))
        bias_rows += [padv(p["be"]), padv(p["b1"]), padv(b2f)]
    bias_rows.append(padv(params["bh"]))                          # head bias row

    bias = jnp.stack(bias_rows)                                   # [3L+1, DP]
    bias = jnp.pad(bias, ((0, 16 - bias.shape[0]), (0, 0)))       # sublane-pad to 16

    return {
        "atom_emb": padc(params["atom_emb"]),                     # [21, DP] f32
        "bond_emb": padc(params["bond_emb"]).astype(bf16),        # [4, DP]  bf16
        "w_pe": padc(params["w_pe"]),                             # [pe, DP] f32 (wrapper)
        "b_pe": padc(params["b_pe"]),                             # [1, DP]  f32 (wrapper)
        "we_cat": jnp.concatenate(we_cat, axis=1).astype(bf16),   # [DP, L*DP] bf16
        "w1": jnp.stack(w1_l).astype(bf16),                       # [L, DP, DP] bf16
        "w2": jnp.stack(w2_l).astype(bf16),                       # [L, DP, DP] bf16 (BN-folded)
        "wh": padrc(params["wh"]).astype(bf16),                   # [DP, DP] bf16
        "bias": bias,                                             # [16, DP] f32 (one slab)
    }


def prepare_graph(edge_index, graph_id, num_nodes, num_graphs):
    """Build dense bf16 incidence / pooling matrices once per graph batch.
    TODO(synk): at realistic graph sizes replace the O(E*N) dense one-hots with a
    scalar-prefetch gather (PrefetchScalarGridSpec) + segment accumulation."""
    bf16 = jnp.bfloat16
    src, dst = edge_index[0], edge_index[1]
    S = jax.nn.one_hot(src, num_nodes, dtype=bf16)                # [E, N]  gather
    Dt = jax.nn.one_hot(dst, num_nodes, dtype=jnp.float32).T      # [N, E]  scatter^T
    G_pad = -(-num_graphs // 8) * 8                               # sublane-pad graph axis
    M = jax.nn.one_hot(graph_id, num_graphs, dtype=jnp.float32).T  # [G, N]
    cnt = jnp.maximum(M.sum(axis=1, keepdims=True), 1.0)          # [G, 1]
    M = M / cnt                                                   # fold mean into M
    M = jnp.pad(M, ((0, G_pad - num_graphs), (0, 0)))             # [G_pad, N]
    return {"S": S, "Dt": Dt.astype(bf16), "M": M.astype(bf16), "G_pad": G_pad}


# ---------------------------------------------------------------------------
# Forward pass: embedding lookups + PE (glue, XLA) + ONE fused Pallas kernel
# ---------------------------------------------------------------------------

def gnn_forward(prep, graph, node_ids, edge_attr_ids, pe, cfg, out_dim, num_graphs):
    # Encoder glue outside the kernel (runs once; keeps kernel operands lane-dense).
    # TODO(synk): WavePE_Encoder internals are not given in the source; approximated
    # as the standard additive PE encoder x + Linear(pe).
    x = jnp.take(prep["atom_emb"], node_ids, axis=0)              # [N, DP]  f32
    x = x + jnp.dot(pe, prep["w_pe"]) + prep["b_pe"]              # + pos enc
    e = jnp.take(prep["bond_emb"], edge_attr_ids, axis=0)         # [E, DP]  bf16

    kern = functools.partial(
        _gnn_fused_kernel,
        num_layer=cfg["num_layer"], gin_eps=0.0,
        neg_slope=0.1, residual=cfg["residual"])

    # Single fused kernel, no grid: every operand is a whole-array VMEM block
    # (default BlockSpecs), DMA'd exactly once.  11 operands total.
    pred_pad = pl.pallas_call(
        kern,
        out_shape=jax.ShapeDtypeStruct((graph["G_pad"], LANE), jnp.float32),
        compiler_params=pltpu.CompilerParams(vmem_limit_bytes=32 * 1024 * 1024),
    )(x, e, graph["S"], graph["Dt"], graph["M"],
      prep["we_cat"], prep["w1"], prep["w2"], prep["wh"], prep["bias"])

    return pred_pad[:num_graphs, :out_dim]


# ---------------------------------------------------------------------------
# Main
# ---------------------------------------------------------------------------

if __name__ == "__main__":
    cfg = dict(num_layer=3, atom_dim=32, bond_dim=32, pe_dim=8,
               dropout=0.0, local_gnn_type="gine", residual=True)
    out_dim = 1
    N, E, G = 32, 64, 2

    key = jax.random.PRNGKey(0)
    k = jax.random.split(key, 8)
    node_ids = jax.random.randint(k[0], (N,), 0, 21, dtype=jnp.int32)
    edge_attr_ids = jax.random.randint(k[1], (E,), 0, 4, dtype=jnp.int32)
    edge_index = jax.random.randint(k[2], (2, E), 0, N, dtype=jnp.int32)
    pe = jax.random.normal(k[3], (N, cfg["pe_dim"]), dtype=jnp.float32)
    graph_id = jnp.concatenate([jnp.zeros(N // 2, jnp.int32),
                                jnp.ones(N - N // 2, jnp.int32)])

    params = init_params(k[4], cfg, out_dim)
    prep = prepare_params(params, cfg, out_dim)                   # once, hoisted
    graph = prepare_graph(edge_index, graph_id, N, G)             # once, hoisted

    pred = gnn_forward(prep, graph, node_ids, edge_attr_ids, pe, cfg, out_dim, G)
    jax.block_until_ready(pred)
    assert pred.shape == (G, out_dim)
    print("KERNEL_OK")
</pallas_src>

<mosaic_0001>
module attributes {stable_mosaic.version = 11 : i64} {
  func.func @_gnn_fused_kernel(%arg0: memref<32x128xf32, #tpu.memory_space<vmem>>, %arg1: memref<64x128xbf16, #tpu.memory_space<vmem>>, %arg2: memref<64x32xbf16, #tpu.memory_space<vmem>>, %arg3: memref<32x64xbf16, #tpu.memory_space<vmem>>, %arg4: memref<8x32xbf16, #tpu.memory_space<vmem>>, %arg5: memref<128x384xbf16, #tpu.memory_space<vmem>>, %arg6: memref<3x128x128xbf16, #tpu.memory_space<vmem>>, %arg7: memref<3x128x128xbf16, #tpu.memory_space<vmem>>, %arg8: memref<128x128xbf16, #tpu.memory_space<vmem>>, %arg9: memref<16x128xf32, #tpu.memory_space<vmem>>, %arg10: memref<8x128xf32, #tpu.memory_space<vmem>>) attributes {dimension_semantics = [], scalar_prefetch = 0 : i64, scratch_operands = 0 : i64, tpu.core_type = #tpu.core_type<tc>} {
    %c0 = arith.constant 0 : index
    %c0_0 = arith.constant 0 : index
    %0 = vector.load %arg0[%c0, %c0_0] : memref<32x128xf32, #tpu.memory_space<vmem>>, vector<32x128xf32>
    %c0_1 = arith.constant 0 : index
    %c0_2 = arith.constant 0 : index
    %1 = vector.load %arg2[%c0_1, %c0_2] : memref<64x32xbf16, #tpu.memory_space<vmem>>, vector<64x32xbf16>
    %c0_3 = arith.constant 0 : index
    %c0_4 = arith.constant 0 : index
    %2 = vector.load %arg3[%c0_3, %c0_4] : memref<32x64xbf16, #tpu.memory_space<vmem>>, vector<32x64xbf16>
    %c0_5 = arith.constant 0 : index
    %c0_6 = arith.constant 0 : index
    %3 = vector.load %arg1[%c0_5, %c0_6] : memref<64x128xbf16, #tpu.memory_space<vmem>>, vector<64x128xbf16>
    %c0_7 = arith.constant 0 : index
    %c0_8 = arith.constant 0 : index
    %4 = vector.load %arg5[%c0_7, %c0_8] : memref<128x384xbf16, #tpu.memory_space<vmem>>, vector<128x384xbf16>
    %cst = arith.constant dense<0.000000e+00> : vector<64x384xf32>
    %5 = tpu.matmul %3, %4, %cst {dimension_numbers = #tpu.dot_dimension_numbers<[1], [0], [0], [1], [0, 0, 1, 1], [], []>} : vector<64x128xbf16>, vector<128x384xbf16>, vector<64x384xf32> -> vector<64x384xf32>
    %6 = vector.extract_strided_slice %5 {offsets = [0, 0], sizes = [64, 128], strides = [1, 1]} : vector<64x384xf32> to vector<64x128xf32>
    %c0_9 = arith.constant 0 : index
    %c0_10 = arith.constant 0 : index
    %7 = vector.load %arg9[%c0_9, %c0_10] : memref<16x128xf32, #tpu.memory_space<vmem>>, vector<1x128xf32>
    %8 = vector.broadcast %7 : vector<1x128xf32> to vector<64x128xf32>
    %9 = arith.addf %6, %8 : vector<64x128xf32>
    %10 = arith.truncf %0 : vector<32x128xf32> to vector<32x128xbf16>
    %cst_11 = arith.constant dense<0.000000e+00> : vector<64x128xf32>
    %11 = tpu.matmul %1, %10, %cst_11 {dimension_numbers = #tpu.dot_dimension_numbers<[1], [0], [0], [1], [0, 0, 1, 1], [], []>} : vector<64x32xbf16>, vector<32x128xbf16>, vector<64x128xf32> -> vector<64x128xf32>
    %12 = arith.addf %11, %9 : vector<64x128xf32>
    %cst_12 = arith.constant 0.000000e+00 : f32
    %13 = vector.broadcast %cst_12 : f32 to vector<64x128xf32>
    %14 = arith.maximumf %12, %13 : vector<64x128xf32>
    %15 = arith.truncf %14 : vector<64x128xf32> to vector<64x128xbf16>
    %cst_13 = arith.constant dense<0.000000e+00> : vector<32x128xf32>
    %16 = tpu.matmul %2, %15, %cst_13 {dimension_numbers = #tpu.dot_dimension_numbers<[1], [0], [0], [1], [0, 0, 1, 1], [], []>} : vector<32x64xbf16>, vector<64x128xbf16>, vector<32x128xf32> -> vector<32x128xf32>
    %17 = arith.addf %0, %16 : vector<32x128xf32>
    %18 = arith.truncf %17 : vector<32x128xf32> to vector<32x128xbf16>
    %c0_14 = arith.constant 0 : index
    %c0_15 = arith.constant 0 : index
    %c0_16 = arith.constant 0 : index
    %19 = vector.load %arg6[%c0_14, %c0_15, %c0_16] : memref<3x128x128xbf16, #tpu.memory_space<vmem>>, vector<1x128x128xbf16>
    %20 = vector.shape_cast %19 : vector<1x128x128xbf16> to vector<128x128xbf16>
    %cst_17 = arith.constant dense<0.000000e+00> : vector<32x128xf32>
    %21 = tpu.matmul %18, %20, %cst_17 {dimension_numbers = #tpu.dot_dimension_numbers<[1], [0], [0], [1], [0, 0, 1, 1], [], []>} : vector<32x128xbf16>, vector<128x128xbf16>, vector<32x128xf32> -> vector<32x128xf32>
    %c1 = arith.constant 1 : index
    %c0_18 = arith.constant 0 : index
    %22 = vector.load %arg9[%c1, %c0_18] : memref<16x128xf32, #tpu.memory_space<vmem>>, vector<1x128xf32>
    %23 = vector.broadcast %22 : vector<1x128xf32> to vector<32x128xf32>
    %24 = arith.addf %21, %23 : vector<32x128xf32>
    %cst_19 = arith.constant 0.000000e+00 : f32
    %25 = vector.broadcast %cst_19 : f32 to vector<32x128xf32>
    %26 = arith.maximumf %24, %25 : vector<32x128xf32>
    %27 = arith.truncf %26 : vector<32x128xf32> to vector<32x128xbf16>
    %c0_20 = arith.constant 0 : index
    %c0_21 = arith.constant 0 : index
    %c0_22 = arith.constant 0 : index
    %28 = vector.load %arg7[%c0_20, %c0_21, %c0_22] : memref<3x128x128xbf16, #tpu.memory_space<vmem>>, vector<1x128x128xbf16>
    %29 = vector.shape_cast %28 : vector<1x128x128xbf16> to vector<128x128xbf16>
    %cst_23 = arith.constant dense<0.000000e+00> : vector<32x128xf32>
    %30 = tpu.matmul %27, %29, %cst_23 {dimension_numbers = #tpu.dot_dimension_numbers<[1], [0], [0], [1], [0, 0, 1, 1], [], []>} : vector<32x128xbf16>, vector<128x128xbf16>, vector<32x128xf32> -> vector<32x128xf32>
    %c2 = arith.constant 2 : index
    %c0_24 = arith.constant 0 : index
    %31 = vector.load %arg9[%c2, %c0_24] : memref<16x128xf32, #tpu.memory_space<vmem>>, vector<1x128xf32>
    %32 = vector.broadcast %31 : vector<1x128xf32> to vector<32x128xf32>
    %33 = arith.addf %30, %32 : vector<32x128xf32>
    %cst_25 = arith.constant 0.000000e+00 : f32
    %34 = vector.broadcast %cst_25 : f32 to vector<32x128xf32>
    %35 = arith.cmpf ogt, %33, %34 : vector<32x128xf32>
    %cst_26 = arith.constant 1.000000e-01 : f32
    %36 = vector.broadcast %cst_26 : f32 to vector<32x128xf32>
    %37 = arith.mulf %36, %33 : vector<32x128xf32>
    %38 = arith.select %35, %33, %37 : vector<32x128xi1>, vector<32x128xf32>
    %39 = arith.addf %33, %38 : vector<32x128xf32>
    %40 = vector.extract_strided_slice %5 {offsets = [0, 128], sizes = [64, 128], strides = [1, 1]} : vector<64x384xf32> to vector<64x128xf32>
    %c3 = arith.constant 3 : index
    %c0_27 = arith.constant 0 : index
    %41 = vector.load %arg9[%c3, %c0_27] : memref<16x128xf32, #tpu.memory_space<vmem>>, vector<1x128xf32>
    %42 = vector.broadcast %41 : vector<1x128xf32> to vector<64x128xf32>
    %43 = arith.addf %40, %42 : vector<64x128xf32>
    %44 = arith.truncf %39 : vector<32x128xf32> to vector<32x128xbf16>
    %cst_28 = arith.constant dense<0.000000e+00> : vector<64x128xf32>
    %45 = tpu.matmul %1, %44, %cst_28 {dimension_numbers = #tpu.dot_dimension_numbers<[1], [0], [0], [1], [0, 0, 1, 1], [], []>} : vector<64x32xbf16>, vector<32x128xbf16>, vector<64x128xf32> -> vector<64x128xf32>
    %46 = arith.addf %45, %43 : vector<64x128xf32>
    %cst_29 = arith.constant 0.000000e+00 : f32
    %47 = vector.broadcast %cst_29 : f32 to vector<64x128xf32>
    %48 = arith.maximumf %46, %47 : vector<64x128xf32>
    %49 = arith.truncf %48 : vector<64x128xf32> to vector<64x128xbf16>
    %cst_30 = arith.constant dense<0.000000e+00> : vector<32x128xf32>
    %50 = tpu.matmul %2, %49, %cst_30 {dimension_numbers = #tpu.dot_dimension_numbers<[1], [0], [0], [1], [0, 0, 1, 1], [], []>} : vector<32x64xbf16>, vector<64x128xbf16>, vector<32x128xf32> -> vector<32x128xf32>
    %51 = arith.addf %39, %50 : vector<32x128xf32>
    %52 = arith.truncf %51 : vector<32x128xf32> to vector<32x128xbf16>
    %c1_31 = arith.constant 1 : index
    %c0_32 = arith.constant 0 : index
    %c0_33 = arith.constant 0 : index
    %53 = vector.load %arg6[%c1_31, %c0_32, %c0_33] : memref<3x128x128xbf16, #tpu.memory_space<vmem>>, vector<1x128x128xbf16>
    %54 = vector.shape_cast %53 : vector<1x128x128xbf16> to vector<128x128xbf16>
    %cst_34 = arith.constant dense<0.000000e+00> : vector<32x128xf32>
    %55 = tpu.matmul %52, %54, %cst_34 {dimension_numbers = #tpu.dot_dimension_numbers<[1], [0], [0], [1], [0, 0, 1, 1], [], []>} : vector<32x128xbf16>, vector<128x128xbf16>, vector<32x128xf32> -> vector<32x128xf32>
    %c4 = arith.constant 4 : index
    %c0_35 = arith.constant 0 : index
    %56 = vector.load %arg9[%c4, %c0_35] : memref<16x128xf32, #tpu.memory_space<vmem>>, vector<1x128xf32>
    %57 = vector.broadcast %56 : vector<1x128xf32> to vector<32x128xf32>
    %58 = arith.addf %55, %57 : vector<32x128xf32>
    %cst_36 = arith.constant 0.000000e+00 : f32
    %59 = vector.broadcast %cst_36 : f32 to vector<32x128xf32>
    %60 = arith.maximumf %58, %59 : vector<32x128xf32>
    %61 = arith.truncf %60 : vector<32x128xf32> to vector<32x128xbf16>
    %c1_37 = arith.constant 1 : index
    %c0_38 = arith.constant 0 : index
    %c0_39 = arith.constant 0 : index
    %62 = vector.load %arg7[%c1_37, %c0_38, %c0_39] : memref<3x128x128xbf16, #tpu.memory_space<vmem>>, vector<1x128x128xbf16>
    %63 = vector.shape_cast %62 : vector<1x128x128xbf16> to vector<128x128xbf16>
    %cst_40 = arith.constant dense<0.000000e+00> : vector<32x128xf32>
    %64 = tpu.matmul %61, %63, %cst_40 {dimension_numbers = #tpu.dot_dimension_numbers<[1], [0], [0], [1], [0, 0, 1, 1], [], []>} : vector<32x128xbf16>, vector<128x128xbf16>, vector<32x128xf32> -> vector<32x128xf32>
    %c5 = arith.constant 5 : index
    %c0_41 = arith.constant 0 : index
    %65 = vector.load %arg9[%c5, %c0_41] : memref<16x128xf32, #tpu.memory_space<vmem>>, vector<1x128xf32>
    %66 = vector.broadcast %65 : vector<1x128xf32> to vector<32x128xf32>
    %67 = arith.addf %64, %66 : vector<32x128xf32>
    %cst_42 = arith.constant 0.000000e+00 : f32
    %68 = vector.broadcast %cst_42 : f32 to vector<32x128xf32>
    %69 = arith.cmpf ogt, %67, %68 : vector<32x128xf32>
    %cst_43 = arith.constant 1.000000e-01 : f32
    %70 = vector.broadcast %cst_43 : f32 to vector<32x128xf32>
    %71 = arith.mulf %70, %67 : vector<32x128xf32>
    %72 = arith.select %69, %67, %71 : vector<32x128xi1>, vector<32x128xf32>
    %73 = arith.addf %67, %72 : vector<32x128xf32>
    %74 = vector.extract_strided_slice %5 {offsets = [0, 256], sizes = [64, 128], strides = [1, 1]} : vector<64x384xf32> to vector<64x128xf32>
    %c6 = arith.constant 6 : index
    %c0_44 = arith.constant 0 : index
    %75 = vector.load %arg9[%c6, %c0_44] : memref<16x128xf32, #tpu.memory_space<vmem>>, vector<1x128xf32>
    %76 = vector.broadcast %75 : vector<1x128xf32> to vector<64x128xf32>
    %77 = arith.addf %74, %76 : vector<64x128xf32>
    %78 = arith.truncf %73 : vector<32x128xf32> to vector<32x128xbf16>
    %cst_45 = arith.constant dense<0.000000e+00> : vector<64x128xf32>
    %79 = tpu.matmul %1, %78, %cst_45 {dimension_numbers = #tpu.dot_dimension_numbers<[1], [0], [0], [1], [0, 0, 1, 1], [], []>} : vector<64x32xbf16>, vector<32x128xbf16>, vector<64x128xf32> -> vector<64x128xf32>
    %80 = arith.addf %79, %77 : vector<64x128xf32>
    %cst_46 = arith.constant 0.000000e+00 : f32
    %81 = vector.broadcast %cst_46 : f32 to vector<64x128xf32>
    %82 = arith.maximumf %80, %81 : vector<64x128xf32>
    %83 = arith.truncf %82 : vector<64x128xf32> to vector<64x128xbf16>
    %cst_47 = arith.constant dense<0.000000e+00> : vector<32x128xf32>
    %84 = tpu.matmul %2, %83, %cst_47 {dimension_numbers = #tpu.dot_dimension_numbers<[1], [0], [0], [1], [0, 0, 1, 1], [], []>} : vector<32x64xbf16>, vector<64x128xbf16>, vector<32x128xf32> -> vector<32x128xf32>
    %85 = arith.addf %73, %84 : vector<32x128xf32>
    %86 = arith.truncf %85 : vector<32x128xf32> to vector<32x128xbf16>
    %c2_48 = arith.constant 2 : index
    %c0_49 = arith.constant 0 : index
    %c0_50 = arith.constant 0 : index
    %87 = vector.load %arg6[%c2_48, %c0_49, %c0_50] : memref<3x128x128xbf16, #tpu.memory_space<vmem>>, vector<1x128x128xbf16>
    %88 = vector.shape_cast %87 : vector<1x128x128xbf16> to vector<128x128xbf16>
    %cst_51 = arith.constant dense<0.000000e+00> : vector<32x128xf32>
    %89 = tpu.matmul %86, %88, %cst_51 {dimension_numbers = #tpu.dot_dimension_numbers<[1], [0], [0], [1], [0, 0, 1, 1], [], []>} : vector<32x128xbf16>, vector<128x128xbf16>, vector<32x128xf32> -> vector<32x128xf32>
    %c7 = arith.constant 7 : index
    %c0_52 = arith.constant 0 : index
    %90 = vector.load %arg9[%c7, %c0_52] : memref<16x128xf32, #tpu.memory_space<vmem>>, vector<1x128xf32>
    %91 = vector.broadcast %90 : vector<1x128xf32> to vector<32x128xf32>
    %92 = arith.addf %89, %91 : vector<32x128xf32>
    %cst_53 = arith.constant 0.000000e+00 : f32
    %93 = vector.broadcast %cst_53 : f32 to vector<32x128xf32>
    %94 = arith.maximumf %92, %93 : vector<32x128xf32>
    %95 = arith.truncf %94 : vector<32x128xf32> to vector<32x128xbf16>
    %c2_54 = arith.constant 2 : index
    %c0_55 = arith.constant 0 : index
    %c0_56 = arith.constant 0 : index
    %96 = vector.load %arg7[%c2_54, %c0_55, %c0_56] : memref<3x128x128xbf16, #tpu.memory_space<vmem>>, vector<1x128x128xbf16>
    %97 = vector.shape_cast %96 : vector<1x128x128xbf16> to vector<128x128xbf16>
    %cst_57 = arith.constant dense<0.000000e+00> : vector<32x128xf32>
    %98 = tpu.matmul %95, %97, %cst_57 {dimension_numbers = #tpu.dot_dimension_numbers<[1], [0], [0], [1], [0, 0, 1, 1], [], []>} : vector<32x128xbf16>, vector<128x128xbf16>, vector<32x128xf32> -> vector<32x128xf32>
    %c8 = arith.constant 8 : index
    %c0_58 = arith.constant 0 : index
    %99 = vector.load %arg9[%c8, %c0_58] : memref<16x128xf32, #tpu.memory_space<vmem>>, vector<1x128xf32>
    %100 = vector.broadcast %99 : vector<1x128xf32> to vector<32x128xf32>
    %101 = arith.addf %98, %100 : vector<32x128xf32>
    %102 = arith.addf %101, %101 : vector<32x128xf32>
    %c0_59 = arith.constant 0 : index
    %c0_60 = arith.constant 0 : index
    %103 = vector.load %arg4[%c0_59, %c0_60] : memref<8x32xbf16, #tpu.memory_space<vmem>>, vector<8x32xbf16>
    %104 = arith.truncf %102 : vector<32x128xf32> to vector<32x128xbf16>
    %cst_61 = arith.constant dense<0.000000e+00> : vector<8x128xf32>
    %105 = tpu.matmul %103, %104, %cst_61 {dimension_numbers = #tpu.dot_dimension_numbers<[1], [0], [0], [1], [0, 0, 1, 1], [], []>} : vector<8x32xbf16>, vector<32x128xbf16>, vector<8x128xf32> -> vector<8x128xf32>
    %106 = arith.truncf %105 : vector<8x128xf32> to vector<8x128xbf16>
    %c0_62 = arith.constant 0 : index
    %c0_63 = arith.constant 0 : index
    %107 = vector.load %arg8[%c0_62, %c0_63] : memref<128x128xbf16, #tpu.memory_space<vmem>>, vector<128x128xbf16>
    %cst_64 = arith.constant dense<0.000000e+00> : vector<8x128xf32>
    %108 = tpu.matmul %106, %107, %cst_64 {dimension_numbers = #tpu.dot_dimension_numbers<[1], [0], [0], [1], [0, 0, 1, 1], [], []>} : vector<8x128xbf16>, vector<128x128xbf16>, vector<8x128xf32> -> vector<8x128xf32>
    %c9 = arith.constant 9 : index
    %c0_65 = arith.constant 0 : index
    %109 = vector.load %arg9[%c9, %c0_65] : memref<16x128xf32, #tpu.memory_space<vmem>>, vector<1x128xf32>
    %110 = vector.broadcast %109 : vector<1x128xf32> to vector<8x128xf32>
    %111 = arith.addf %108, %110 : vector<8x128xf32>
    %c0_66 = arith.constant 0 : index
    %c0_67 = arith.constant 0 : index
    %112 = vector.load %arg10[%c0_66, %c0_67] : memref<8x128xf32, #tpu.memory_space<vmem>>, vector<8x128xf32>
    tpu.vector_store %arg10[%c0_66, %c0_67], %111 {strides = array<i32>} : memref<8x128xf32, #tpu.memory_space<vmem>>, vector<8x128xf32>,
    return
  }
}

</mosaic_0001>

<bundles_post_ra>
// kernel: tpu_custom_call.1
= control target key start
LH: loop header
LB: loop body
LE: loop exit
PB: predicated region body
PF: predicated region fallthrough
CT: control target
= control target key end

     0   :  { %15 = vsyncpa [#allocation3], 0  ;;  %s3130_s0 = inlined_call_operand.hbm [shape: f32[32,128], index: 0, kind: input, shape index: {}]   ;;  %s3131_s1 = inlined_call_operand.hbm [shape: bf16[64,128], index: 1, kind: input, shape index: {}]   ;;  %s3132_s2 = inlined_call_operand.vmem [shape: bf16[64,32], index: 2, kind: input, shape index: {}]   ;;  %s3133_s3 = inlined_call_operand.hbm [shape: bf16[32,64], index: 3, kind: input, shape index: {}]   ;;  %s3134_s4 = inlined_call_operand.hbm [shape: bf16[8,32], index: 4, kind: input, shape index: {}]   ;;  %s3135_s5 = inlined_call_operand.hbm [shape: bf16[128,384], index: 5, kind: input, shape index: {}]   ;;  %s3136_s6 = inlined_call_operand.hbm [shape: bf16[3,128,128], index: 6, kind: input, shape index: {}]   ;;  %s3137_s7 = inlined_call_operand.hbm [shape: bf16[3,128,128], index: 7, kind: input, shape index: {}]   ;;  %s3138_s8 = inlined_call_operand.vmem [shape: bf16[128,128], index: 8, kind: input, shape index: {}]   ;;  %s3139_s9 = inlined_call_operand.vmem [shape: f32[16,128], index: 9, kind: input, shape index: {}]   ;;  %s3140_s10 = inlined_call_operand.hbm [shape: f32[8,128], index: 10, kind: output, shape index: {}]  }
   0x1   :  { %16 = vsyncpa [#allocation6], 0 }
   0x2   :  { %17 = vsyncpa [#allocation9], 0 }
   0x3   :  { %18 = vsyncpa [#allocation12], 0 }
   0x4   :  { %19 = vsyncpa [#allocation4], 0  ;;  %s2712_s13 = smov [#allocation5]   ;;  %s2526_s17 = scalar_lea.hbm %s3131_s1, 512 }
   0x5   :  { %s37_s14 = sshll.u32 %s2712_s13, 4  ;;  %p2527_p0 = scmp.ne.s32.totalorder %s3131_s1, %s2526_s17  ;;  %s38_s14 = int_to_ptr.vmem [resolvable:$true] %s37_s14 }
   0x6   :  { %p2530_p1 = scmp.lt.u32.totalorder %s2526_s17, %s3131_s1 }
   0x8   :  { %p2532_p2 = pnand %p2530_p1, %p2527_p0 }
   0xa   :  { %2535 = shalt.err (!%p2532_p2)
}
   0xb   :  { %s2536_s22 = scalar_lea.vmem %s38_s14, 512  ;;  %p2541_p4 = scmp.lt.s32.totalorder %s38_s14, %s38_s14 }
   0xc   :  { %p2537_p3 = scmp.ne.s32.totalorder %s38_s14, %s2536_s22  ;;  %p2542_p5 = scmp.lt.s32.totalorder %s2536_s22, %s2536_s22 }
   0xe   :  { %p2543_p6 = por %p2542_p5, %p2541_p4 }
  0x10   :  { %p2544_p7 = pnand %p2543_p6, %p2537_p3 }
  0x12   :  { %2547 = shalt.err (!%p2544_p7)
}
  0x13   :  { %s2713_s23 = smov 64   ;;  %s2714_s24 = smov 4  }
  0x14   :  { %43 = dma.hbm_to_vmem [thread:$0]  %s3131_s1, 512, %s38_s14, [#allocation6], %s2713_s23, %s2713_s23, %s2714_s24  }
  0x15   :  { %s2715_s27 = smov [#allocation8]   ;;  %s2716_s29 = smov [#allocation11]  }
  0x16   :  { %s64_s28 = sshll.u32 %s2715_s27, 4  ;;  %s85_s30 = sshll.u32 %s2716_s29, 4  ;;  %s65_s28 = int_to_ptr.vmem [resolvable:$true] %s64_s28  ;;  %s86_s30 = int_to_ptr.vmem [resolvable:$true] %s85_s30 }
  0x17   :  { %s2548_s13 = scalar_lea.hbm %s3134_s4, 64 }
  0x18   :  { %p2549_p8 = scmp.ne.s32.totalorder %s3134_s4, %s2548_s13  ;;  %p2552_p9 = scmp.lt.u32.totalorder %s2548_s13, %s3134_s4 }
  0x1a   :  { %p2554_p10 = pnand %p2552_p9, %p2549_p8 }
  0x1c   :  { %2557 = shalt.err (!%p2554_p10)
}
  0x1d   :  { %s2558_s1 = scalar_lea.vmem %s65_s28, 64  ;;  %p2563_p12 = scmp.lt.s32.totalorder %s65_s28, %s65_s28 }
  0x1e   :  { %p2559_p11 = scmp.ne.s32.totalorder %s65_s28, %s2558_s1  ;;  %p2564_p13 = scmp.lt.s32.totalorder %s2558_s1, %s2558_s1 }
  0x20   :  { %p2565_p0 = por %p2564_p13, %p2563_p12 }
  0x22   :  { %p2566_p1 = pnand %p2565_p0, %p2559_p11 }
  0x24   :  { %2569 = shalt.err (!%p2566_p1)
}
  0x25   :  { %67 = dma.hbm_to_vmem [thread:$0]  %s3134_s4, 64, %s65_s28, [#allocation9]  }
  0x26   :  { %s2570_s22 = scalar_lea.hbm %s3136_s6, 3072 }
  0x27   :  { %p2571_p2 = scmp.ne.s32.totalorder %s3136_s6, %s2570_s22  ;;  %p2574_p3 = scmp.lt.u32.totalorder %s2570_s22, %s3136_s6 }
  0x29   :  { %p2576_p4 = pnand %p2574_p3, %p2571_p2 }
  0x2b   :  { %2579 = shalt.err (!%p2576_p4)
}
  0x2c   :  { %s2580_s11 = scalar_lea.vmem %s86_s30, 3072  ;;  %p2585_p6 = scmp.lt.s32.totalorder %s86_s30, %s86_s30 }
  0x2d   :  { %p2581_p5 = scmp.ne.s32.totalorder %s86_s30, %s2580_s11  ;;  %p2586_p7 = scmp.lt.s32.totalorder %s2580_s11, %s2580_s11 }
  0x2f   :  { %p2587_p8 = por %p2586_p7, %p2585_p6 }
  0x31   :  { %p2588_p9 = pnand %p2587_p8, %p2581_p5 }
  0x33   :  { %2591 = shalt.err (!%p2588_p9)
}
  0x34   :  { %91 = dma.hbm_to_vmem [thread:$0]  %s3136_s6, 3072, %s86_s30, [#allocation12], %s2713_s23, %s2713_s23, %s2714_s24  }
  0x35   :  { %s2717_s12 = smov [#allocation2]   ;;  %s2592_s17 = scalar_lea.hbm %s3130_s0, 512 }
  0x36   :  { %s25_s13 = sshll.u32 %s2717_s12, 4  ;;  %p2593_p10 = scmp.ne.s32.totalorder %s3130_s0, %s2592_s17  ;;  %s26_s13 = int_to_ptr.vmem [resolvable:$true] %s25_s13 }
  0x37   :  { %p2596_p11 = scmp.lt.u32.totalorder %s2592_s17, %s3130_s0 }
  0x39   :  { %p2598_p12 = pnand %p2596_p11, %p2593_p10 }
  0x3b   :  { %2601 = shalt.err (!%p2598_p12)
}
  0x3c   :  { %s2602_s20 = scalar_lea.vmem %s26_s13, 512  ;;  %p2607_p0 = scmp.lt.s32.totalorder %s26_s13, %s26_s13 }
  0x3d   :  { %p2603_p13 = scmp.ne.s32.totalorder %s26_s13, %s2602_s20  ;;  %p2608_p1 = scmp.lt.s32.totalorder %s2602_s20, %s2602_s20 }
  0x3f   :  { %p2609_p2 = por %p2608_p1, %p2607_p0 }
  0x41   :  { %p2610_p3 = pnand %p2609_p2, %p2603_p13 }
  0x43   :  { %2613 = shalt.err (!%p2610_p3)
}
  0x44   :  { %s2718_s6 = smov 128   ;;  %s2719_s30 = smov 8  }
  0x45   :  { %31 = dma.hbm_to_vmem [thread:$0]  %s3130_s0, 512, %s26_s13, [#allocation3], %s2718_s6, %s2718_s6, %s2719_s30  }
  0x46   :  { %s2720_s25 = smov [#allocation7]   ;;  %s2721_s27 = smov [#allocation10]  }
  0x47   :  { %s51_s26 = sshll.u32 %s2720_s25, 4  ;;  %s73_s29 = sshll.u32 %s2721_s27, 4  ;;  %s52_s26 = int_to_ptr.vmem [resolvable:$true] %s51_s26  ;;  %s2838_s29 = int_to_ptr.vmem [resolvable:$true] %s73_s29 }
  0x48   :  { %s2614_s28 = scalar_lea.hbm %s3133_s3, 256 }
  0x49   :  { %p2615_p4 = scmp.ne.s32.totalorder %s3133_s3, %s2614_s28  ;;  %p2618_p5 = scmp.lt.u32.totalorder %s2614_s28, %s3133_s3 }
  0x4b   :  { %p2620_p6 = pnand %p2618_p5, %p2615_p4 }
  0x4d   :  { %2623 = shalt.err (!%p2620_p6)
}
  0x4e   :  { %s2624_s0 = scalar_lea.vmem %s52_s26, 256  ;;  %p2629_p8 = scmp.lt.s32.totalorder %s52_s26, %s52_s26 }
  0x4f   :  { %p2625_p7 = scmp.ne.s32.totalorder %s52_s26, %s2624_s0  ;;  %p2630_p9 = scmp.lt.s32.totalorder %s2624_s0, %s2624_s0 }
  0x51   :  { %p2631_p10 = por %p2630_p9, %p2629_p8 }
  0x53   :  { %p2632_p11 = pnand %p2631_p10, %p2625_p7 }
  0x55   :  { %2635 = shalt.err (!%p2632_p11)
}
  0x56   :  { %57 = dma.hbm_to_vmem [thread:$0]  %s3133_s3, 256, %s52_s26, [#allocation6], %s2713_s23, %s2713_s23, %s2714_s24  }
  0x57   :  { %s2636_s19 = scalar_lea.hbm %s3135_s5, 3072 }
  0x58   :  { %p2637_p12 = scmp.ne.s32.totalorder %s3135_s5, %s2636_s19  ;;  %p2640_p13 = scmp.lt.u32.totalorder %s2636_s19, %s3135_s5 }
  0x5a   :  { %p2642_p0 = pnand %p2640_p13, %p2637_p12 }
  0x5c   :  { %2645 = shalt.err (!%p2642_p0)
}
  0x5d   :  { %s2646_s22 = scalar_lea.vmem %s2838_s29, 3072  ;;  %p2651_p2 = scmp.lt.s32.totalorder %s2838_s29, %s2838_s29 }
  0x5e   :  { %p2647_p1 = scmp.ne.s32.totalorder %s2838_s29, %s2646_s22  ;;  %p2652_p3 = scmp.lt.s32.totalorder %s2646_s22, %s2646_s22 }
  0x60   :  { %p2653_p4 = por %p2652_p3, %p2651_p2 }
  0x62   :  { %p2654_p5 = pnand %p2653_p4, %p2647_p1 }
  0x64   :  { %2657 = shalt.err (!%p2654_p5)
}
  0x65   :  { %s2722_s3 = smov 192   ;;  %s2723_s25 = smov 12  }
  0x66   :  { %79 = dma.hbm_to_vmem [thread:$0]  %s3135_s5, 3072, %s2838_s29, [#allocation9], %s2722_s3, %s2722_s3, %s2723_s25  }
  0x67   :  { %s2724_s11 = smov [#allocation13]   ;;  %s2658_s15 = scalar_lea.hbm %s3137_s7, 3072 }
  0x68   :  { %s97_s4 = sshll.u32 %s2724_s11, 4  ;;  %p2659_p6 = scmp.ne.s32.totalorder %s3137_s7, %s2658_s15  ;;  %s98_s4 = int_to_ptr.vmem [resolvable:$true] %s97_s4 }
  0x69   :  { %p2662_p7 = scmp.lt.u32.totalorder %s2658_s15, %s3137_s7 }
  0x6b   :  { %p2664_p8 = pnand %p2662_p7, %p2659_p6 }
  0x6d   :  { %2667 = shalt.err (!%p2664_p8)
}
  0x6e   :  { %s2668_s18 = scalar_lea.vmem %s98_s4, 3072  ;;  %p2673_p10 = scmp.lt.s32.totalorder %s98_s4, %s98_s4 }
  0x6f   :  { %p2669_p9 = scmp.ne.s32.totalorder %s98_s4, %s2668_s18  ;;  %p2674_p11 = scmp.lt.s32.totalorder %s2668_s18, %s2668_s18 }
  0x71   :  { %p2675_p12 = por %p2674_p11, %p2673_p10 }
  0x73   :  { %p2676_p13 = pnand %p2675_p12, %p2669_p9 }
  0x75   :  { %2679 = shalt.err (!%p2676_p13)
}
  0x76   :  { %103 = dma.hbm_to_vmem [thread:$0]  %s3137_s7, 3072, %s98_s4, [#allocation12], %s2713_s23, %s2713_s23, %s2714_s24  }
  0x77   :  { %2702 = dma.done.wait [#allocation3], 512  }
  0x78   :  { %2703 = vsyncadd [#allocation3], 4294966784 }
  0x79   :  { %2704 = dma.done.wait [#allocation6], 768  }
  0x7a   :  { %2705 = vsyncadd [#allocation6], 4294966528 }
  0x7b   :  { %2706 = dma.done.wait [#allocation9], 3136  }
  0x7c   :  { %2707 = vsyncadd [#allocation9], 4294964160 }
  0x7d   :  { %2708 = dma.done.wait [#allocation12], 6144  }
  0x7e   :  { %2709 = vsyncadd [#allocation12], 4294961152  ;;  %v2725_v0 = vmov 0   ;;  %v2424_v1 = vld [vmem:[#allocation10 + $0x4] ss:$12 sps:$4 sm:$0xff]   ;;  %v2889_v9 = vld [vmem:[#allocation2 + $0x8] sm:$0xff] }
  0x7f   :  { %370 = vmatprep.mubr.bf16.mxu0 %v2725_v0  ;;  %v2426_v2 = vld [vmem:[#allocation10] ss:$12 sps:$4 sm:$0xff]   ;;  %338 = vmatprep.subr.bf16.mxu0 %v2424_v1  ;;  %v2427_v3 = vld [vmem:[#allocation10 + $0x1c] ss:$12 sps:$4 sm:$0xff]   ;;  %v2429_v4 = vld [vmem:[#allocation10 + $0x18] ss:$12 sps:$4 sm:$0xff]  }
  0x80   :  { %339 = vmatpush1.bf16.msra.mxu0 %v2426_v2  ;;  %v2430_v5 = vld [vmem:[#allocation10 + $0x34] ss:$12 sps:$4 sm:$0xff]   ;;  %v2432_v6 = vld [vmem:[#allocation10 + $0x30] ss:$12 sps:$4 sm:$0xff]   ;;  %v2433_v7 = vld [vmem:[#allocation10 + $0x4c] ss:$12 sps:$4 sm:$0xff]  }
  0x81   :  { %340 = vmatprep.subr.bf16.mxu0 %v2427_v3  ;;  %v2887_v8 = vld [vmem:[#allocation2] sm:$0xff]  ;;  %v2435_v11 = vld [vmem:[#allocation10 + $0x48] ss:$12 sps:$4 sm:$0xff]   ;;  %v2893_v12 = vld [vmem:[#allocation2 + $0x10] sm:$0xff]  ;;  %vm511_vm0 = vcmask 261120   ;;  %vm611_vm1 = vcmask 523264  }
  0x82   :  { %v489_v10 = vpack.c.bf16 %v2889_v9, %v2887_v8  ;;  %v2895_v13 = vld [vmem:[#allocation2 + $0x18] sm:$0xff]  ;;  %v2902_v16 = vld [vmem:[%s3132_s2] sm:$0xff]   ;;  %v2909_v19 = vld [vmem:[%s3132_s2 + $0x8] sm:$0xff]   ;;  %vm2727_vm10 = vmmov 0   ;;  %s2728_s18 = smov [#allocation14]  }
  0x83   :  { %v2436_v14 = vld [vmem:[#allocation10 + $0x64] ss:$12 sps:$4 sm:$0xff]   ;;  %v490_v15 = vpack.c.bf16 %v2895_v13, %v2893_v12  ;;  %v2438_v17 = vld [vmem:[#allocation10 + $0x60] ss:$12 sps:$4 sm:$0xff]   ;;  %v2439_v18 = vld [vmem:[#allocation10 + $0x7c] ss:$12 sps:$4 sm:$0xff]   ;;  %2175 = vmatprep.mubr.msk.bf16.mxu1 %vm511_vm0, %v2902_v16 }
  0x84   :  { %341 = vmatpush1.bf16.msra.mxu0 %v2429_v4  ;;  %2171 = vmatprep.subr.bf16.mxu1 %v489_v10  ;;  %v2914_v20 = vld [vmem:[%s3132_s2 + $0x10] sm:$0xff]   ;;  %v2441_v21 = vld [vmem:[#allocation10 + $0x78] ss:$12 sps:$4 sm:$0xff]   ;;  %v2447_v26 = vld [vmem:[#allocation10 + $0xa8] ss:$12 sps:$4 sm:$0xff]   ;;  %s1896_s5 = sshll.u32 %s2728_s18, 4  ;;  %s1897_s5 = int_to_ptr.vmem [resolvable:$true] %s1896_s5 }
  0x85   :  { %342 = vmatprep.subr.bf16.mxu0 %v2430_v5  ;;  %2172 = vmatpush3.bf16.msra.mxu1 %v489_v10  ;;  %v2442_v22 = vld [vmem:[#allocation10 + $0x94] ss:$12 sps:$4 sm:$0xff]   ;;  %v2444_v23 = vld [vmem:[#allocation10 + $0x90] ss:$12 sps:$4 sm:$0xff]   ;;  %v2445_v24 = vld [vmem:[#allocation10 + $0xac] ss:$12 sps:$4 sm:$0xff]   ;;  %p2685_p1 = scmp.lt.s32.totalorder %s1897_s5, %s1897_s5 }
  0x86   :  { %2173 = vmatprep.subr.bf16.mxu1 %v490_v15  ;;  %v2923_v25 = vld [vmem:[%s3132_s2 + $0x18] sm:$0xff]   ;;  %v2448_v27 = vld [vmem:[#allocation5] sm:$0xff]   ;;  %v2927_v28 = vld [vmem:[#allocation5 + $0x8] sm:$0xff]  }
  0x87   :  { %v2930_v29 = vld [vmem:[#allocation5 + $0x10] sm:$0xff]   ;;  %v2933_v30 = vld [vmem:[#allocation5 + $0x18] sm:$0xff]   ;;  %v2936_v31 = vld [vmem:[#allocation7] sm:$0xff]  }
  0x88   :  { %343 = vmatpush1.bf16.msra.mxu0 %v2432_v6  ;;  %v1936_v40 = vld [vmem:[%s3139_s9] ss:$0 sm:$0xff] }
  0x89   :  { %344 = vmatprep.subr.bf16.mxu0 %v2433_v7  ;;  %2174 = vmatpush3.bf16.msra.mxu1 %v490_v15 }
  0x8c   :  { %345 = vmatpush1.bf16.msra.mxu0 %v2435_v11  ;;  %2176 = vmatmul.mubr.msk.bf16.vlgmr.msra.gmra.mrb[0].mxu1 %vm511_vm0, %v2909_v19 }
  0x8d   :  { %346 = vmatprep.subr.bf16.mxu0 %v2436_v14  ;;  %2179 = vmatprep.mubr.msk.bf16.mxu1 %vm511_vm0, %v2914_v20 }
  0x90   :  { %347 = vmatpush1.bf16.msra.mxu0 %v2438_v17 }
  0x91   :  { %348 = vmatprep.subr.bf16.mxu0 %v2439_v18 }
  0x94   :  { %349 = vmatpush1.bf16.msra.mxu0 %v2441_v21  ;;  %2180 = vmatmul.mubr.msk.bf16.gmra.mrb[4].mxu1 %vm511_vm0, %v2923_v25 }
  0x95   :  { %350 = vmatprep.subr.bf16.mxu0 %v2442_v22  ;;  %2191 = vmatprep.mubr.msk.bf16.mxu1 %vm611_vm1, %v2936_v31 }
  0x98   :  { %351 = vmatpush1.bf16.msra.mxu0 %v2444_v23 }
  0x99   :  { %352 = vmatprep.subr.bf16.mxu0 %v2445_v24 }
  0x9c   :  { %353 = vmatpush1.bf16.msra.mxu0 %v2447_v26 }
  0x9f   :  { %371 = vmatmul.mubr.bf16.vlgmr.msra.gmra.mrb[0].mxu0 %v2448_v27 }
  0xa0   :  { %380 = vmatprep.mubr.bf16.mxu0 %v2725_v0 }
  0xa7   :  { %381 = vmatmul.mubr.bf16.gmra.mrb[4].mxu0 %v2927_v28 }
  0xa8   :  { %390 = vmatprep.mubr.bf16.mxu0 %v2725_v0 }
  0xaf   :  { %391 = vmatmul.mubr.bf16.gmra.mrb[8].mxu0 %v2930_v29 }
  0xb0   :  { %400 = vmatprep.mubr.bf16.mxu0 %v2725_v0 }
  0xb7   :  { %401 = vmatmul.mubr.bf16.gmra.mrb[12].mxu0 %v2933_v30 }
  0xb8   :  { %2163 = vmatprep.mubr.bf16.mxu0 %v2448_v27 }
 0x15f   :  { %v2177_v32 = vpop.f32.mrb[0].mxu1 }
 0x160   :  { %v558_v33 = vpop.f32.mrb[1].mxu1 }
 0x161   :  { %v2178_v34 = vpop.f32.mrb[2].mxu1 }
 0x162   :  { %v561_v35 = vpop.f32.mrb[3].mxu1 }
 0x167   :  { %v2181_v36 = vpop.f32.mrb[4].mxu1 }
 0x168   :  { %v574_v37 = vpop.f32.mrb[5].mxu1 }
 0x169   :  { %v2182_v38 = vpop.f32.mrb[6].mxu1 }
 0x16a   :  { %v577_v39 = vpop.f32.mrb[7].mxu1 }
 0x172   :  { %v372_v41 = vpop.f32.mrb[0].mxu0 }
 0x173   :  { %v481_v42 = vadd.f32 %v1936_v40, %v372_v41  ;;  %v2943_v43 = vpop.f32.mrb[1].mxu0  ;;  %v2465_v41 = vld [vmem:[#allocation11 + $0x38] sm:$0xff]  }
 0x174   :  { %v376_v44 = vpop.f32.mrb[2].mxu0 }
 0x175   :  { %v482_v45 = vadd.f32 %v1936_v40, %v376_v44  ;;  %v559_v46 = vadd.f32 %v558_v33, %v481_v42  ;;  %v2945_v47 = vpop.f32.mrb[3].mxu0  ;;  %v2458_v33 = vld [vmem:[#allocation11] sm:$0xff]   ;;  %v2466_v42 = vld [vmem:[#allocation10 + $0x8] ss:$12 sps:$4 sm:$0xff]  }
 0x176   :  { %v2467_v44 = vld [vmem:[#allocation10 + $0x20] ss:$12 sps:$4 sm:$0xff]   ;;  %2147 = vmatprep.subr.bf16.mxu0 %v2466_v42 }
 0x177   :  { %v562_v48 = vadd.f32 %v561_v35, %v482_v45  ;;  %v589_v49 = vmax.f32 %v559_v46, 0.0  ;;  %v2459_v35 = vld [vmem:[#allocation11 + $0x8] sm:$0xff]   ;;  %2148 = vmatpush3.bf16.msra.mxu0 %v2466_v42  ;;  %v2468_v45 = vld [vmem:[#allocation10 + $0x38] ss:$12 sps:$4 sm:$0xff]   ;;  %v2469_v46 = vld [vmem:[#allocation10 + $0x50] ss:$12 sps:$4 sm:$0xff]  }
 0x178   :  { %2149 = vmatprep.subr.bf16.mxu0 %v2467_v44 }
 0x179   :  { %v590_v50 = vmax.f32 %v562_v48, 0.0  ;;  %v2470_v48 = vld [vmem:[#allocation10 + $0x68] ss:$12 sps:$4 sm:$0xff]  }
 0x17a   :  { %v382_v51 = vpop.f32.mrb[4].mxu0 }
 0x17b   :  { %v597_v52 = vpack.c.bf16 %v590_v50, %v589_v49  ;;  %v483_v53 = vadd.f32 %v1936_v40, %v382_v51  ;;  %v2947_v54 = vpop.f32.mrb[5].mxu0  ;;  %2150 = vmatpush3.bf16.msra.mxu0 %v2467_v44  ;;  %v2471_v49 = vld [vmem:[#allocation10 + $0x80] ss:$12 sps:$4 sm:$0xff]   ;;  %v2472_v50 = vld [vmem:[#allocation10 + $0x98] ss:$12 sps:$4 sm:$0xff]  }
 0x17c   :  { %v386_v55 = vpop.f32.mrb[6].mxu0  ;;  %2151 = vmatprep.subr.bf16.mxu0 %v2468_v45  ;;  %v2473_v51 = vld [vmem:[#allocation10 + $0xb0] ss:$12 sps:$4 sm:$0xff]  }
 0x17d   :  { %v567_v56 = vadd.f32 %v2177_v32, %v483_v53  ;;  %v484_v57 = vadd.f32 %v1936_v40, %v386_v55  ;;  %v2949_v58 = vpop.f32.mrb[7].mxu0  ;;  %2183 = vmatprep.subr.bf16.mxu1 %v597_v52  ;;  %v2475_v53 = vld [vmem:[#allocation13 + $0x8] sm:$0xff]   ;;  %v2476_v55 = vld [vmem:[#allocation13 + $0x10] sm:$0xff]  }
 0x17e   :  { %2184 = vmatpush3.bf16.msra.mxu1 %v597_v52  ;;  %v2474_v52 = vld [vmem:[#allocation13] sm:$0xff]  }
 0x17f   :  { %v570_v59 = vadd.f32 %v2178_v34, %v484_v57  ;;  %v591_v60 = vmax.f32 %v567_v56, 0.0  ;;  %v2959_v34 = vld [vmem:[#allocation7 + $0x8] sm:$0xff]   ;;  %2152 = vmatpush3.bf16.msra.mxu0 %v2468_v45  ;;  %v2478_v57 = vld [vmem:[#allocation13 + $0x20] sm:$0xff]  }
 0x180   :  { %2153 = vmatprep.subr.bf16.mxu0 %v2469_v46  ;;  %v2477_v56 = vld [vmem:[#allocation13 + $0x18] sm:$0xff]  }
 0x181   :  { %v592_v61 = vmax.f32 %v570_v59, 0.0  ;;  %v2479_v59 = vld [vmem:[#allocation13 + $0x28] sm:$0xff]  }
 0x182   :  { %v392_v62 = vpop.f32.mrb[8].mxu0 }
 0x183   :  { %v485_v63 = vadd.f32 %v1936_v40, %v392_v62  ;;  %v2951_v0 = vpop.f32.mrb[9].mxu0  ;;  %v598_v1 = vpack.c.bf16 %v592_v61, %v591_v60  ;;  %2154 = vmatpush3.bf16.msra.mxu0 %v2469_v46 }
 0x184   :  { %v396_v2 = vpop.f32.mrb[10].mxu0  ;;  %2155 = vmatprep.subr.bf16.mxu0 %v2470_v48 }
 0x185   :  { %v486_v3 = vadd.f32 %v1936_v40, %v396_v2  ;;  %v575_v4 = vadd.f32 %v574_v37, %v485_v63  ;;  %v2953_v5 = vpop.f32.mrb[11].mxu0  ;;  %2185 = vmatprep.subr.bf16.mxu1 %v598_v1  ;;  %v2461_v37 = vld [vmem:[#allocation11 + $0x18] sm:$0xff]  }
 0x186   :  { %2186 = vmatpush3.bf16.msra.mxu1 %v598_v1 }
 0x187   :  { %v578_v6 = vadd.f32 %v577_v39, %v486_v3  ;;  %v593_v7 = vmax.f32 %v575_v4, 0.0  ;;  %v2463_v39 = vld [vmem:[#allocation11 + $0x28] sm:$0xff]   ;;  %2156 = vmatpush3.bf16.msra.mxu0 %v2470_v48  ;;  %v2480_v4 = vld [vmem:[#allocation13 + $0x30] sm:$0xff]  }
 0x188   :  { %2157 = vmatprep.subr.bf16.mxu0 %v2471_v49 }
 0x189   :  { %v594_v10 = vmax.f32 %v578_v6, 0.0  ;;  %v2481_v6 = vld [vmem:[#allocation13 + $0x38] sm:$0xff]  }
 0x18a   :  { %v402_v11 = vpop.f32.mrb[12].mxu0 }
 0x18b   :  { %v599_v14 = vpack.c.bf16 %v594_v10, %v593_v7  ;;  %v487_v15 = vadd.f32 %v1936_v40, %v402_v11  ;;  %v2955_v17 = vpop.f32.mrb[13].mxu0  ;;  %2158 = vmatpush3.bf16.msra.mxu0 %v2471_v49 }
 0x18c   :  { %v406_v18 = vpop.f32.mrb[14].mxu0  ;;  %2159 = vmatprep.subr.bf16.mxu0 %v2472_v50 }
 0x18d   :  { %v583_v21 = vadd.f32 %v2181_v36, %v487_v15  ;;  %v488_v22 = vadd.f32 %v1936_v40, %v406_v18  ;;  %v2957_v23 = vpop.f32.mrb[15].mxu0  ;;  %2187 = vmatprep.subr.bf16.mxu1 %v599_v14  ;;  %v2460_v36 = vld [vmem:[#allocation11 + $0x10] sm:$0xff]  }
 0x18e   :  { %2188 = vmatpush3.bf16.msra.mxu1 %v599_v14  ;;  %v2464_v40 = vld [vmem:[#allocation11 + $0x30] sm:$0xff]   ;;  %v1949_v14 = vld [vmem:[%s3139_s9 + $0x1] ss:$0 sm:$0xff] }
 0x18f   :  { %v586_v24 = vadd.f32 %v2182_v38, %v488_v22  ;;  %v595_v26 = vmax.f32 %v583_v21, 0.0  ;;  %v2462_v38 = vld [vmem:[#allocation11 + $0x20] sm:$0xff]   ;;  %2160 = vmatpush3.bf16.msra.mxu0 %v2472_v50 }
 0x190   :  { %2161 = vmatprep.subr.bf16.mxu0 %v2473_v51 }
 0x191   :  { %v596_v27 = vmax.f32 %v586_v24, 0.0 }
 0x193   :  { %v600_v32 = vpack.c.bf16 %v596_v27, %v595_v26  ;;  %2162 = vmatpush3.bf16.msra.mxu0 %v2473_v51 }
 0x194   :  { %2215 = vmatprep.subr.bf16.mxu0 %v2474_v52 }
 0x195   :  { %2189 = vmatprep.subr.bf16.mxu1 %v600_v32 }
 0x196   :  { %2190 = vmatpush3.bf16.msra.mxu1 %v600_v32  ;;  %2164 = vmatmul.mubr.bf16.vlgmr.msra.gmra.mrb[16].mxu0 %v2927_v28 }
 0x197   :  { %2195 = vmatprep.subr.bf16.mxu1 %v2458_v33  ;;  %2216 = vmatpush3.bf16.msra.mxu0 %v2474_v52 }
 0x198   :  { %2167 = vmatprep.mubr.bf16.mxu0 %v2930_v29  ;;  %2217 = vmatprep.subr.bf16.mxu0 %v2475_v53 }
 0x199   :  { %2192 = vmatmul.mubr.msk.bf16.vlgmr.msra.gmra.mrb[8].mxu1 %vm611_vm1, %v2959_v34 }
 0x19a   :  { %2196 = vmatpush3.bf16.msra.mxu1 %v2458_v33 }
 0x19b   :  { %2197 = vmatprep.subr.bf16.mxu1 %v2459_v35  ;;  %2218 = vmatpush3.bf16.msra.mxu0 %v2475_v53 }
 0x19c   :  { %2219 = vmatprep.subr.bf16.mxu0 %v2476_v55 }
 0x19e   :  { %2198 = vmatpush3.bf16.msra.mxu1 %v2459_v35  ;;  %2168 = vmatmul.mubr.bf16.gmra.mrb[20].mxu0 %v2933_v30 }
 0x19f   :  { %2199 = vmatprep.subr.bf16.mxu1 %v2460_v36  ;;  %2220 = vmatpush3.bf16.msra.mxu0 %v2476_v55 }
 0x1a0   :  { %2221 = vmatprep.subr.bf16.mxu0 %v2477_v56 }
 0x1a2   :  { %2200 = vmatpush3.bf16.msra.mxu1 %v2460_v36 }
 0x1a3   :  { %2201 = vmatprep.subr.bf16.mxu1 %v2461_v37  ;;  %2222 = vmatpush3.bf16.msra.mxu0 %v2477_v56 }
 0x1a4   :  { %2223 = vmatprep.subr.bf16.mxu0 %v2478_v57 }
 0x1a6   :  { %2202 = vmatpush3.bf16.msra.mxu1 %v2461_v37 }
 0x1a7   :  { %2203 = vmatprep.subr.bf16.mxu1 %v2462_v38  ;;  %2224 = vmatpush3.bf16.msra.mxu0 %v2478_v57 }
 0x1a8   :  { %2225 = vmatprep.subr.bf16.mxu0 %v2479_v59 }
 0x1aa   :  { %2204 = vmatpush3.bf16.msra.mxu1 %v2462_v38 }
 0x1ab   :  { %2205 = vmatprep.subr.bf16.mxu1 %v2463_v39  ;;  %2226 = vmatpush3.bf16.msra.mxu0 %v2479_v59 }
 0x1ac   :  { %2227 = vmatprep.subr.bf16.mxu0 %v2480_v4 }
 0x1ae   :  { %2206 = vmatpush3.bf16.msra.mxu1 %v2463_v39 }
 0x1af   :  { %2207 = vmatprep.subr.bf16.mxu1 %v2464_v40  ;;  %2228 = vmatpush3.bf16.msra.mxu0 %v2480_v4  ;;  %v2485_v4 = vld [vmem:[#allocation11 + $0x58] sm:$0xff]  }
 0x1b0   :  { %2229 = vmatprep.subr.bf16.mxu0 %v2481_v6 }
 0x1b2   :  { %2208 = vmatpush3.bf16.msra.mxu1 %v2464_v40  ;;  %v1958_v40 = vld [vmem:[%s3139_s9 + $0x2] ss:$0 sm:$0xff] }
 0x1b3   :  { %2209 = vmatprep.subr.bf16.mxu1 %v2465_v41  ;;  %2230 = vmatpush3.bf16.msra.mxu0 %v2481_v6 }
 0x1b6   :  { %2210 = vmatpush3.bf16.msra.mxu1 %v2465_v41 }
 0x26c   :  { %v2193_v28 = vpop.f32.mrb[8].mxu1 }
 0x26d   :  { %v652_v60 = vpop.f32.mrb[9].mxu1  ;;  %v669_v29 = vadd.f32 %v2193_v28, %v2893_v12  ;;  %v2972_v12 = vpop.f32.mrb[16].mxu0 }
 0x26e   :  { %v2194_v61 = vpop.f32.mrb[10].mxu1  ;;  %v667_v1 = vadd.f32 %v652_v60, %v2887_v8 }
 0x26f   :  { %v670_v62 = vadd.f32 %v2194_v61, %v2895_v13  ;;  %v655_v63 = vpop.f32.mrb[11].mxu1  ;;  %v2974_v13 = vpop.f32.mrb[17].mxu0 }
 0x270   :  { %v668_v30 = vadd.f32 %v655_v63, %v2889_v9  ;;  %v2976_v8 = vpop.f32.mrb[18].mxu0 }
 0x271   :  { %v672_v2 = vpack.c.bf16 %v670_v62, %v669_v29  ;;  %v2978_v9 = vpop.f32.mrb[19].mxu0 }
 0x272   :  { %v671_v3 = vpack.c.bf16 %v668_v30, %v667_v1  ;;  %v2980_v7 = vpop.f32.mrb[20].mxu0  ;;  %v2482_v30 = vld [vmem:[#allocation11 + $0x40] sm:$0xff]  }
 0x273   :  { %v2982_v10 = vpop.f32.mrb[21].mxu0  ;;  %2259 = vmatprep.subr.bf16.mxu0 %v2482_v30 }
 0x274   :  { %2211 = vmatprep.mubr.bf16.mxu1 %v671_v3  ;;  %v2984_v11 = vpop.f32.mrb[22].mxu0  ;;  %v2484_v3 = vld [vmem:[#allocation11 + $0x50] sm:$0xff]  }
 0x275   :  { %2212 = vmatmul.mubr.bf16.vlgmr.msra.gmra.mrb[12].mxu1 %v672_v2  ;;  %v2483_v2 = vld [vmem:[#allocation11 + $0x48] sm:$0xff]  }
 0x276   :  { %2239 = vmatprep.mubr.msk.bf16.mxu1 %vm511_vm0, %v2902_v16  ;;  %v2986_v16 = vpop.f32.mrb[23].mxu0 }
 0x348   :  { %v2213_v15 = vpop.f32.mrb[12].mxu1 }
 0x349   :  { %v785_v18 = vadd.f32 %v2213_v15, %v1949_v14  ;;  %v776_v21 = vpop.f32.mrb[13].mxu1 }
 0x34a   :  { %v777_v22 = vadd.f32 %v1949_v14, %v776_v21  ;;  %v2214_v24 = vpop.f32.mrb[14].mxu1 }
 0x34b   :  { %v788_v26 = vadd.f32 %v2214_v24, %v1949_v14  ;;  %v779_v27 = vpop.f32.mrb[15].mxu1  ;;  %v793_v33 = vmax.f32 %v785_v18, 0.0 }
 0x34c   :  { %v780_v32 = vadd.f32 %v1949_v14, %v779_v27  ;;  %v791_v36 = vmax.f32 %v777_v22, 0.0 }
 0x34d   :  { %v794_v35 = vmax.f32 %v788_v26, 0.0 }
 0x34e   :  { %v792_v37 = vmax.f32 %v780_v32, 0.0 }
 0x34f   :  { %v796_v38 = vpack.c.bf16 %v794_v35, %v793_v33 }
 0x350   :  { %v795_v39 = vpack.c.bf16 %v792_v37, %v791_v36 }
 0x352   :  { %2231 = vmatprep.mubr.bf16.mxu0 %v795_v39 }
 0x353   :  { %2232 = vmatmul.mubr.bf16.vlgmr.msra.gmra.mrb[24].mxu0 %v796_v38 }
 0x354   :  { %2260 = vmatpush3.bf16.msra.mxu0 %v2482_v30  ;;  %v2495_v30 = vld [vmem:[#allocation13 + $0x68] sm:$0xff]  }
 0x355   :  { %2261 = vmatprep.subr.bf16.mxu0 %v2483_v2 }
 0x358   :  { %2262 = vmatpush3.bf16.msra.mxu0 %v2483_v2 }
 0x359   :  { %2263 = vmatprep.subr.bf16.mxu0 %v2484_v3 }
 0x35c   :  { %2264 = vmatpush3.bf16.msra.mxu0 %v2484_v3 }
 0x35d   :  { %2265 = vmatprep.subr.bf16.mxu0 %v2485_v4 }
 0x360   :  { %2266 = vmatpush3.bf16.msra.mxu0 %v2485_v4 }
 0x426   :  { %v2233_v41 = vpop.f32.mrb[24].mxu0 }
 0x427   :  { %v909_v42 = vadd.f32 %v2233_v41, %v1958_v40  ;;  %v900_v44 = vpop.f32.mrb[25].mxu0 }
 0x428   :  { %v901_v45 = vadd.f32 %v1958_v40, %v900_v44  ;;  %v2234_v46 = vpop.f32.mrb[26].mxu0 }
 0x429   :  { %v912_v48 = vadd.f32 %v2234_v46, %v1958_v40  ;;  %v903_v49 = vpop.f32.mrb[27].mxu0  ;;  %v921_v50 = vmul.f32 0.1, %v909_v42  ;;  %vm917_vm3 = vcmp.gt.f32.partialorder %v909_v42, 0.0 }
 0x42a   :  { %vm915_vm2 = vcmp.gt.f32.partialorder %v901_v45, 0.0  ;;  %v919_v51 = vmul.f32 0.1, %v901_v45  ;;  %v904_v52 = vadd.f32 %v1958_v40, %v903_v49 }
 0x42b   :  { %vm918_vm4 = vcmp.gt.f32.partialorder %v912_v48, 0.0  ;;  %v922_v53 = vmul.f32 0.1, %v912_v48  ;;  %v925_v28 = vsel %vm917_vm3, %v909_v42, %v921_v50 }
 0x42c   :  { %vm916_vm5 = vcmp.gt.f32.partialorder %v904_v52, 0.0  ;;  %v920_v55 = vmul.f32 0.1, %v904_v52  ;;  %v923_v56 = vsel %vm915_vm2, %v901_v45, %v919_v51  ;;  %v3002_v63 = vadd.f32 %v925_v28, %v909_v42  ;;  %v2492_v28 = vld [vmem:[#allocation13 + $0x50] sm:$0xff]  }
 0x42d   :  { %v926_v57 = vsel %vm918_vm4, %v912_v48, %v922_v53  ;;  %v2994_v60 = vadd.f32 %v923_v56, %v901_v45 }
 0x42e   :  { %v924_v59 = vsel %vm916_vm5, %v904_v52, %v920_v55  ;;  %v2998_v29 = vadd.f32 %v926_v57, %v912_v48  ;;  %v2490_v57 = vld [vmem:[#allocation13 + $0x40] sm:$0xff]  }
 0x42f   :  { %v2996_v61 = vadd.f32 %v924_v59, %v904_v52  ;;  %v2491_v59 = vld [vmem:[#allocation13 + $0x48] sm:$0xff]  }
 0x430   :  { %v945_v1 = vpack.c.bf16 %v2998_v29, %v3002_v63 }
 0x431   :  { %v944_v62 = vpack.c.bf16 %v2996_v61, %v2994_v60 }
 0x433   :  { %2235 = vmatprep.subr.bf16.mxu1 %v944_v62 }
 0x434   :  { %2236 = vmatpush3.bf16.msra.mxu1 %v944_v62  ;;  %v2493_v62 = vld [vmem:[#allocation13 + $0x58] sm:$0xff]  }
 0x435   :  { %2237 = vmatprep.subr.bf16.mxu1 %v945_v1 }
 0x438   :  { %2238 = vmatpush3.bf16.msra.mxu1 %v945_v1  ;;  %v2494_v1 = vld [vmem:[#allocation13 + $0x60] sm:$0xff]  }
 0x43b   :  { %2240 = vmatmul.mubr.msk.bf16.vlgmr.msra.gmra.mrb[16].mxu1 %vm511_vm0, %v2909_v19  ;;  %v2486_v19 = vld [vmem:[#allocation11 + $0x60] sm:$0xff]  }
 0x43c   :  { %2243 = vmatprep.mubr.msk.bf16.mxu1 %vm511_vm0, %v2914_v20  ;;  %2267 = vmatprep.subr.bf16.mxu0 %v2486_v19  ;;  %v2487_v20 = vld [vmem:[#allocation11 + $0x68] sm:$0xff]  }
 0x43d   :  { %2268 = vmatpush3.bf16.msra.mxu0 %v2486_v19 }
 0x43e   :  { %2269 = vmatprep.subr.bf16.mxu0 %v2487_v20 }
 0x441   :  { %2270 = vmatpush3.bf16.msra.mxu0 %v2487_v20 }
 0x443   :  { %2244 = vmatmul.mubr.msk.bf16.gmra.mrb[20].mxu1 %vm511_vm0, %v2923_v25  ;;  %v1967_v25 = vld [vmem:[%s3139_s9 + $0x3] ss:$0 sm:$0xff] }
 0x444   :  { %2255 = vmatprep.mubr.msk.bf16.mxu1 %vm611_vm1, %v2936_v31  ;;  %v938_v6 = vadd.f32 %v1967_v25, %v2947_v54  ;;  %v936_v14 = vadd.f32 %v1967_v25, %v2943_v43  ;;  %v939_v18 = vadd.f32 %v1967_v25, %v2949_v58  ;;  %v937_v24 = vadd.f32 %v1967_v25, %v2945_v47 }
 0x445   :  { %v942_v54 = vadd.f32 %v1967_v25, %v2955_v17  ;;  %v940_v43 = vadd.f32 %v1967_v25, %v2951_v0  ;;  %v943_v42 = vadd.f32 %v1967_v25, %v2957_v23  ;;  %v941_v45 = vadd.f32 %v1967_v25, %v2953_v5  ;;  %v2488_v5 = vld [vmem:[#allocation11 + $0x70] sm:$0xff]   ;;  %v2489_v23 = vld [vmem:[#allocation11 + $0x78] sm:$0xff]  }
 0x446   :  { %2271 = vmatprep.subr.bf16.mxu0 %v2488_v5 }
 0x447   :  { %2272 = vmatpush3.bf16.msra.mxu0 %v2488_v5 }
 0x448   :  { %2273 = vmatprep.subr.bf16.mxu0 %v2489_v23 }
 0x44b   :  { %2274 = vmatpush3.bf16.msra.mxu0 %v2489_v23 }
 0x50e   :  { %v2241_v15 = vpop.f32.mrb[16].mxu1 }
 0x50f   :  { %v989_v21 = vadd.f32 %v2241_v15, %v938_v6  ;;  %v980_v22 = vpop.f32.mrb[17].mxu1 }
 0x510   :  { %v981_v26 = vadd.f32 %v980_v22, %v936_v14  ;;  %v2242_v27 = vpop.f32.mrb[18].mxu1  ;;  %v2497_v22 = vld [vmem:[#allocation13 + $0x78] sm:$0xff]  }
 0x511   :  { %v992_v32 = vadd.f32 %v2242_v27, %v939_v18  ;;  %v983_v33 = vpop.f32.mrb[19].mxu1  ;;  %v1013_v36 = vmax.f32 %v989_v21, 0.0  ;;  %v2496_v21 = vld [vmem:[#allocation13 + $0x70] sm:$0xff]  }
 0x512   :  { %v984_v35 = vadd.f32 %v983_v33, %v937_v24  ;;  %v1011_v38 = vmax.f32 %v981_v26, 0.0 }
 0x513   :  { %v1014_v37 = vmax.f32 %v992_v32, 0.0 }
 0x514   :  { %v1012_v39 = vmax.f32 %v984_v35, 0.0 }
 0x515   :  { %v1020_v40 = vpack.c.bf16 %v1014_v37, %v1013_v36 }
 0x516   :  { %v1019_v41 = vpack.c.bf16 %v1012_v39, %v1011_v38  ;;  %v2245_v58 = vpop.f32.mrb[20].mxu1 }
 0x517   :  { %v1005_v44 = vadd.f32 %v2245_v58, %v942_v54  ;;  %v996_v47 = vpop.f32.mrb[21].mxu1  ;;  %v2522_v54 = vld [vmem:[%s3132_s2] sm:$0xff]  }
 0x518   :  { %v997_v46 = vadd.f32 %v996_v47, %v940_v43  ;;  %v2246_v48 = vpop.f32.mrb[22].mxu1  ;;  %2247 = vmatprep.subr.bf16.mxu1 %v1019_v41 }
 0x519   :  { %v1008_v49 = vadd.f32 %v2246_v48, %v943_v42  ;;  %v999_v50 = vpop.f32.mrb[23].mxu1  ;;  %2248 = vmatpush3.bf16.msra.mxu1 %v1019_v41  ;;  %v1017_v17 = vmax.f32 %v1005_v44, 0.0 }
 0x51a   :  { %v1000_v51 = vadd.f32 %v999_v50, %v941_v45  ;;  %2249 = vmatprep.subr.bf16.mxu1 %v1020_v40  ;;  %v1015_v53 = vmax.f32 %v997_v46, 0.0 }
 0x51b   :  { %v1018_v52 = vmax.f32 %v1008_v49, 0.0 }
 0x51c   :  { %v1016_v0 = vmax.f32 %v1000_v51, 0.0 }
 0x51d   :  { %v1022_v55 = vpack.c.bf16 %v1018_v52, %v1017_v17  ;;  %2250 = vmatpush3.bf16.msra.mxu1 %v1020_v40  ;;  %v1983_v40 = vld [vmem:[%s3139_s9 + $0x5] ss:$0 sm:$0xff] }
 0x51e   :  { %v1021_v56 = vpack.c.bf16 %v1016_v0, %v1015_v53 }
 0x520   :  { %2251 = vmatprep.subr.bf16.mxu1 %v1021_v56 }
 0x521   :  { %2252 = vmatpush3.bf16.msra.mxu1 %v1021_v56 }
 0x522   :  { %2253 = vmatprep.subr.bf16.mxu1 %v1022_v55 }
 0x525   :  { %2254 = vmatpush3.bf16.msra.mxu1 %v1022_v55 }
 0x526   :  { %2279 = vmatprep.subr.bf16.mxu1 %v2490_v57 }
 0x528   :  { %2256 = vmatmul.mubr.msk.bf16.vlgmr.msra.gmra.mrb[24].mxu1 %vm611_vm1, %v2959_v34 }
 0x529   :  { %2280 = vmatpush3.bf16.msra.mxu1 %v2490_v57 }
 0x52a   :  { %2281 = vmatprep.subr.bf16.mxu1 %v2491_v59 }
 0x52d   :  { %2282 = vmatpush3.bf16.msra.mxu1 %v2491_v59 }
 0x52e   :  { %2283 = vmatprep.subr.bf16.mxu1 %v2492_v28 }
 0x531   :  { %2284 = vmatpush3.bf16.msra.mxu1 %v2492_v28  ;;  %v2523_v28 = vld [vmem:[%s3132_s2 + $0x8] sm:$0xff]  }
 0x532   :  { %2285 = vmatprep.subr.bf16.mxu1 %v2493_v62 }
 0x535   :  { %2286 = vmatpush3.bf16.msra.mxu1 %v2493_v62  ;;  %v2524_v62 = vld [vmem:[%s3132_s2 + $0x10] sm:$0xff]  }
 0x536   :  { %2287 = vmatprep.subr.bf16.mxu1 %v2494_v1 }
 0x539   :  { %2288 = vmatpush3.bf16.msra.mxu1 %v2494_v1  ;;  %v2525_v1 = vld [vmem:[%s3132_s2 + $0x18] sm:$0xff]  }
 0x53a   :  { %2289 = vmatprep.subr.bf16.mxu1 %v2495_v30 }
 0x53d   :  { %2290 = vmatpush3.bf16.msra.mxu1 %v2495_v30  ;;  %v1992_v30 = vld [vmem:[%s3139_s9 + $0x6] ss:$0 sm:$0xff] }
 0x53e   :  { %2291 = vmatprep.subr.bf16.mxu1 %v2496_v21 }
 0x541   :  { %2292 = vmatpush3.bf16.msra.mxu1 %v2496_v21 }
 0x542   :  { %2293 = vmatprep.subr.bf16.mxu1 %v2497_v22 }
 0x545   :  { %2294 = vmatpush3.bf16.msra.mxu1 %v2497_v22 }
 0x5fb   :  { %v2257_v2 = vpop.f32.mrb[24].mxu1 }
 0x5fc   :  { %v1057_v3 = vpop.f32.mrb[25].mxu1  ;;  %v1074_v19 = vadd.f32 %v2257_v2, %v3002_v63  ;;  %v1345_v2 = vadd.f32 %v2972_v12, %v1992_v30  ;;  %v1349_v12 = vadd.f32 %v2980_v7, %v1992_v30 }
 0x5fd   :  { %v2258_v4 = vpop.f32.mrb[26].mxu1  ;;  %v1072_v6 = vadd.f32 %v1057_v3, %v2994_v60  ;;  %v1343_v3 = vadd.f32 %v1992_v30, %v2974_v13  ;;  %v1347_v13 = vadd.f32 %v1992_v30, %v2982_v10 }
 0x5fe   :  { %v1075_v20 = vadd.f32 %v2258_v4, %v2998_v29  ;;  %v1060_v25 = vpop.f32.mrb[27].mxu1  ;;  %v1974_v29 = vld [vmem:[%s3139_s9 + $0x4] ss:$0 sm:$0xff] }
 0x5ff   :  { %v1073_v14 = vadd.f32 %v1060_v25, %v2996_v61 }
 0x600   :  { %v1077_v15 = vpack.c.bf16 %v1075_v20, %v1074_v19  ;;  %v1346_v19 = vadd.f32 %v2976_v8, %v1992_v30 }
 0x601   :  { %v1076_v18 = vpack.c.bf16 %v1073_v14, %v1072_v6  ;;  %v1344_v6 = vadd.f32 %v1992_v30, %v2978_v9 }
 0x603   :  { %2275 = vmatprep.mubr.bf16.mxu0 %v1076_v18 }
 0x604   :  { %2276 = vmatmul.mubr.bf16.vlgmr.msra.gmra.mrb[28].mxu0 %v1077_v15 }
 0x605   :  { %2319 = vmatprep.mubr.msk.bf16.mxu0 %vm611_vm1, %v2936_v31 }
 0x6d7   :  { %v2277_v60 = vpop.f32.mrb[28].mxu0 }
 0x6d8   :  { %v1191_v63 = vadd.f32 %v2277_v60, %v1974_v29  ;;  %v1182_v61 = vpop.f32.mrb[29].mxu0 }
 0x6d9   :  { %v1183_v24 = vadd.f32 %v1974_v29, %v1182_v61  ;;  %v2278_v26 = vpop.f32.mrb[30].mxu0 }
 0x6da   :  { %v1194_v27 = vadd.f32 %v2278_v26, %v1974_v29  ;;  %v1185_v32 = vpop.f32.mrb[31].mxu0  ;;  %v1199_v35 = vmax.f32 %v1191_v63, 0.0 }
 0x6db   :  { %v1186_v33 = vadd.f32 %v1974_v29, %v1185_v32  ;;  %v1197_v36 = vmax.f32 %v1183_v24, 0.0 }
 0x6dc   :  { %v1200_v31 = vmax.f32 %v1194_v27, 0.0  ;;  %v1350_v27 = vadd.f32 %v2984_v11, %v1992_v30  ;;  %v2498_v11 = vld [vmem:[#allocation11 + $0x80] sm:$0xff]  }
 0x6dd   :  { %v1198_v37 = vmax.f32 %v1186_v33, 0.0  ;;  %v1348_v33 = vadd.f32 %v1992_v30, %v2986_v16  ;;  %v2499_v16 = vld [vmem:[#allocation11 + $0x88] sm:$0xff]  }
 0x6de   :  { %v1202_v38 = vpack.c.bf16 %v1200_v31, %v1199_v35 }
 0x6df   :  { %v1201_v39 = vpack.c.bf16 %v1198_v37, %v1197_v36 }
 0x6e1   :  { %2295 = vmatprep.mubr.bf16.mxu1 %v1201_v39 }
 0x6e2   :  { %2296 = vmatmul.mubr.bf16.vlgmr.msra.gmra.mrb[28].mxu1 %v1202_v38 }
 0x6e3   :  { %2303 = vmatprep.mubr.msk.bf16.mxu1 %vm511_vm0, %v2522_v54 }
 0x7b5   :  { %v2297_v43 = vpop.f32.mrb[28].mxu1 }
 0x7b6   :  { %v1316_v41 = vadd.f32 %v2297_v43, %v1983_v40  ;;  %v1307_v58 = vpop.f32.mrb[29].mxu1 }
 0x7b7   :  { %v1308_v42 = vadd.f32 %v1983_v40, %v1307_v58  ;;  %v2298_v44 = vpop.f32.mrb[30].mxu1  ;;  %v2501_v58 = vld [vmem:[#allocation11 + $0x98] sm:$0xff]  }
 0x7b8   :  { %v1319_v47 = vadd.f32 %v2298_v44, %v1983_v40  ;;  %v1310_v45 = vpop.f32.mrb[31].mxu1  ;;  %v1328_v46 = vmul.f32 0.1, %v1316_v41  ;;  %vm1324_vm7 = vcmp.gt.f32.partialorder %v1316_v41, 0.0  ;;  %v2503_v44 = vld [vmem:[#allocation11 + $0xa8] sm:$0xff]  }
 0x7b9   :  { %vm1322_vm6 = vcmp.gt.f32.partialorder %v1308_v42, 0.0  ;;  %v1326_v48 = vmul.f32 0.1, %v1308_v42  ;;  %v1311_v49 = vadd.f32 %v1983_v40, %v1310_v45  ;;  %v2505_v45 = vld [vmem:[#allocation11 + $0xb8] sm:$0xff]  }
 0x7ba   :  { %vm1325_vm8 = vcmp.gt.f32.partialorder %v1319_v47, 0.0  ;;  %v1329_v50 = vmul.f32 0.1, %v1319_v47  ;;  %v1332_v0 = vsel %vm1324_vm7, %v1316_v41, %v1328_v46  ;;  %v2507_v46 = vld [vmem:[#allocation13 + $0x88] sm:$0xff]  }
 0x7bb   :  { %vm1323_vm9 = vcmp.gt.f32.partialorder %v1311_v49, 0.0  ;;  %v1327_v51 = vmul.f32 0.1, %v1311_v49  ;;  %v1330_v17 = vsel %vm1322_vm6, %v1308_v42, %v1326_v48  ;;  %v3051_v57 = vadd.f32 %v1332_v0, %v1316_v41  ;;  %v2500_v41 = vld [vmem:[#allocation11 + $0x90] sm:$0xff]  }
 0x7bc   :  { %v1333_v52 = vsel %vm1325_vm8, %v1319_v47, %v1329_v50  ;;  %v3043_v55 = vadd.f32 %v1330_v17, %v1308_v42  ;;  %v2502_v42 = vld [vmem:[#allocation11 + $0xa0] sm:$0xff]   ;;  %v2508_v48 = vld [vmem:[#allocation13 + $0x90] sm:$0xff]  }
 0x7bd   :  { %v1331_v53 = vsel %vm1323_vm9, %v1311_v49, %v1327_v51  ;;  %v3047_v5 = vadd.f32 %v1333_v52, %v1319_v47  ;;  %v2504_v47 = vld [vmem:[#allocation11 + $0xb0] sm:$0xff]   ;;  %v2510_v50 = vld [vmem:[#allocation13 + $0xa0] sm:$0xff]   ;;  %v2511_v51 = vld [vmem:[#allocation13 + $0xa8] sm:$0xff]  }
 0x7be   :  { %v3045_v56 = vadd.f32 %v1331_v53, %v1311_v49  ;;  %v2509_v49 = vld [vmem:[#allocation13 + $0x98] sm:$0xff]  }
 0x7bf   :  { %v1352_v59 = vpack.c.bf16 %v3047_v5, %v3051_v57 }
 0x7c0   :  { %v1351_v23 = vpack.c.bf16 %v3045_v56, %v3043_v55 }
 0x7c2   :  { %2299 = vmatprep.subr.bf16.mxu1 %v1351_v23 }
 0x7c3   :  { %2300 = vmatpush3.bf16.msra.mxu1 %v1351_v23 }
 0x7c4   :  { %2301 = vmatprep.subr.bf16.mxu1 %v1352_v59 }
 0x7c7   :  { %2302 = vmatpush3.bf16.msra.mxu1 %v1352_v59 }
 0x7ca   :  { %2304 = vmatmul.mubr.msk.bf16.vlgmr.msra.gmra.mrb[32].mxu1 %vm511_vm0, %v2523_v28 }
 0x7cb   :  { %2307 = vmatprep.mubr.msk.bf16.mxu1 %vm511_vm0, %v2524_v62 }
 0x7d2   :  { %2308 = vmatmul.mubr.msk.bf16.gmra.mrb[36].mxu1 %vm511_vm0, %v2525_v1 }
 0x89d   :  { %v2305_v4 = vpop.f32.mrb[32].mxu1 }
 0x89e   :  { %v1396_v20 = vadd.f32 %v2305_v4, %v1345_v2  ;;  %v1387_v25 = vpop.f32.mrb[33].mxu1  ;;  %v2512_v2 = vld [vmem:[#allocation13 + $0xb0] sm:$0xff]  }
 0x89f   :  { %v1388_v14 = vadd.f32 %v1387_v25, %v1343_v3  ;;  %v2306_v15 = vpop.f32.mrb[34].mxu1  ;;  %v2513_v3 = vld [vmem:[#allocation13 + $0xb8] sm:$0xff]  }
 0x8a0   :  { %v1399_v18 = vadd.f32 %v2306_v15, %v1346_v19  ;;  %v1390_v21 = vpop.f32.mrb[35].mxu1  ;;  %v1420_v29 = vmax.f32 %v1396_v20, 0.0 }
 0x8a1   :  { %v1391_v22 = vadd.f32 %v1390_v21, %v1344_v6  ;;  %v1418_v63 = vmax.f32 %v1388_v14, 0.0 }
 0x8a2   :  { %v1421_v60 = vmax.f32 %v1399_v18, 0.0 }
 0x8a3   :  { %v1419_v61 = vmax.f32 %v1391_v22, 0.0 }
 0x8a4   :  { %v1427_v24 = vpack.c.bf16 %v1421_v60, %v1420_v29  ;;  %v2726_v60 = vmov 0.0  }
 0x8a5   :  { %v1426_v26 = vpack.c.bf16 %v1419_v61, %v1418_v63  ;;  %v2309_v8 = vpop.f32.mrb[36].mxu1  ;;  %v2514_v63 = vld [vmem:[%s3138_s8] sm:$0xff]   ;;  %v2515_v61 = vld [vmem:[%s3138_s8 + $0x8] sm:$0xff]  }
 0x8a6   :  { %v1412_v32 = vadd.f32 %v2309_v8, %v1349_v12  ;;  %v1403_v9 = vpop.f32.mrb[37].mxu1  ;;  %v2516_v12 = vld [vmem:[%s3138_s8 + $0x10] sm:$0xff]  }
 0x8a7   :  { %v1404_v35 = vadd.f32 %v1403_v9, %v1347_v13  ;;  %v2310_v31 = vpop.f32.mrb[38].mxu1  ;;  %2311 = vmatprep.subr.bf16.mxu0 %v1426_v26  ;;  %v2518_v13 = vld [vmem:[%s3138_s8 + $0x20] sm:$0xff]   ;;  %v2520_v8 = vld [vmem:[%s3138_s8 + $0x30] sm:$0xff]  }
 0x8a8   :  { %v1415_v36 = vadd.f32 %v2310_v31, %v1350_v27  ;;  %v1406_v37 = vpop.f32.mrb[39].mxu1  ;;  %2312 = vmatpush3.bf16.msra.mxu0 %v1426_v26  ;;  %v1424_v7 = vmax.f32 %v1412_v32, 0.0  ;;  %v2519_v26 = vld [vmem:[%s3138_s8 + $0x28] sm:$0xff]  }
 0x8a9   :  { %v1407_v38 = vadd.f32 %v1406_v37, %v1348_v33  ;;  %2313 = vmatprep.subr.bf16.mxu0 %v1427_v24  ;;  %v1422_v54 = vmax.f32 %v1404_v35, 0.0  ;;  %v2008_v27 = vld [vmem:[%s3139_s9 + $0x8] ss:$0 sm:$0xff] }
 0x8aa   :  { %v1425_v39 = vmax.f32 %v1415_v36, 0.0 }
 0x8ab   :  { %v1423_v10 = vmax.f32 %v1407_v38, 0.0 }
 0x8ac   :  { %v1429_v40 = vpack.c.bf16 %v1425_v39, %v1424_v7  ;;  %2314 = vmatpush3.bf16.msra.mxu0 %v1427_v24  ;;  %v2517_v24 = vld [vmem:[%s3138_s8 + $0x18] sm:$0xff]  }
 0x8ad   :  { %v1428_v43 = vpack.c.bf16 %v1423_v10, %v1422_v54 }
 0x8af   :  { %2315 = vmatprep.subr.bf16.mxu0 %v1428_v43 }
 0x8b0   :  { %2316 = vmatpush3.bf16.msra.mxu0 %v1428_v43 }
 0x8b1   :  { %2317 = vmatprep.subr.bf16.mxu0 %v1429_v40 }
 0x8b4   :  { %2318 = vmatpush3.bf16.msra.mxu0 %v1429_v40 }
 0x8b5   :  { %2323 = vmatprep.subr.bf16.mxu0 %v2498_v11 }
 0x8b7   :  { %2320 = vmatmul.mubr.msk.bf16.vlgmr.msra.gmra.mrb[32].mxu0 %vm611_vm1, %v2959_v34  ;;  %v2506_v34 = vld [vmem:[#allocation13 + $0x80] sm:$0xff]  }
 0x8b8   :  { %2324 = vmatpush3.bf16.msra.mxu0 %v2498_v11  ;;  %2343 = vmatprep.subr.bf16.mxu1 %v2506_v34  ;;  %v1733_v11 = vld [vmem:[#allocation8] sm:$0xf] }
 0x8b9   :  { %2325 = vmatprep.subr.bf16.mxu0 %v2499_v16  ;;  %2344 = vmatpush3.bf16.msra.mxu1 %v2506_v34 }
 0x8ba   :  { %2345 = vmatprep.subr.bf16.mxu1 %v2507_v46 }
 0x8bc   :  { %2326 = vmatpush3.bf16.msra.mxu0 %v2499_v16  ;;  %v2521_v16 = vld [vmem:[%s3138_s8 + $0x38] sm:$0xff]   ;;  %s2680_s8 = scalar_lea.vmem %s1897_s5, 128 }
 0x8bd   :  { %2327 = vmatprep.subr.bf16.mxu0 %v2500_v41  ;;  %2346 = vmatpush3.bf16.msra.mxu1 %v2507_v46  ;;  %p2681_p0 = scmp.ne.s32.totalorder %s1897_s5, %s2680_s8  ;;  %p2686_p2 = scmp.lt.s32.totalorder %s2680_s8, %s2680_s8 }
 0x8be   :  { %2347 = vmatprep.subr.bf16.mxu1 %v2508_v48 }
 0x8bf   :  { %p2687_p3 = por %p2686_p2, %p2685_p1 }
 0x8c0   :  { %2328 = vmatpush3.bf16.msra.mxu0 %v2500_v41 }
 0x8c1   :  { %2329 = vmatprep.subr.bf16.mxu0 %v2501_v58  ;;  %2348 = vmatpush3.bf16.msra.mxu1 %v2508_v48  ;;  %p2688_p4 = pnand %p2687_p3, %p2681_p0 }
 0x8c2   :  { %2349 = vmatprep.subr.bf16.mxu1 %v2509_v49 }
 0x8c4   :  { %2330 = vmatpush3.bf16.msra.mxu0 %v2501_v58 }
 0x8c5   :  { %2331 = vmatprep.subr.bf16.mxu0 %v2502_v42  ;;  %2350 = vmatpush3.bf16.msra.mxu1 %v2509_v49 }
 0x8c6   :  { %2351 = vmatprep.subr.bf16.mxu1 %v2510_v50 }
 0x8c8   :  { %2332 = vmatpush3.bf16.msra.mxu0 %v2502_v42 }
 0x8c9   :  { %2333 = vmatprep.subr.bf16.mxu0 %v2503_v44  ;;  %2352 = vmatpush3.bf16.msra.mxu1 %v2510_v50 }
 0x8ca   :  { %2353 = vmatprep.subr.bf16.mxu1 %v2511_v51 }
 0x8cc   :  { %2334 = vmatpush3.bf16.msra.mxu0 %v2503_v44 }
 0x8cd   :  { %2335 = vmatprep.subr.bf16.mxu0 %v2504_v47  ;;  %2354 = vmatpush3.bf16.msra.mxu1 %v2511_v51 }
 0x8ce   :  { %2355 = vmatprep.subr.bf16.mxu1 %v2512_v2 }
 0x8d0   :  { %2336 = vmatpush3.bf16.msra.mxu0 %v2504_v47 }
 0x8d1   :  { %2337 = vmatprep.subr.bf16.mxu0 %v2505_v45  ;;  %2356 = vmatpush3.bf16.msra.mxu1 %v2512_v2 }
 0x8d2   :  { %2357 = vmatprep.subr.bf16.mxu1 %v2513_v3 }
 0x8d4   :  { %2338 = vmatpush3.bf16.msra.mxu0 %v2505_v45  ;;  %v2018_v45 = vld [vmem:[%s3139_s9 + $0x9] ss:$0 sm:$0xff] }
 0x8d5   :  { %2358 = vmatpush3.bf16.msra.mxu1 %v2513_v3  ;;  %2363 = vmatprep.subr.bf16.mxu0 %v2726_v60 }
 0x8d6   :  { %2371 = vmatprep.subr.bf16.mxu1 %v2726_v60 }
 0x98a   :  { %v2321_v17 = vpop.f32.mrb[32].mxu0 }
 0x98b   :  { %v1464_v52 = vpop.f32.mrb[33].mxu0  ;;  %v1481_v0 = vadd.f32 %v2321_v17, %v3051_v57  ;;  %v1999_v57 = vld [vmem:[%s3139_s9 + $0x7] ss:$0 sm:$0xff] }
 0x98c   :  { %v2322_v53 = vpop.f32.mrb[34].mxu0  ;;  %v1479_v28 = vadd.f32 %v1464_v52, %v3043_v55 }
 0x98d   :  { %v1482_v23 = vadd.f32 %v2322_v53, %v3047_v5  ;;  %v1467_v59 = vpop.f32.mrb[35].mxu0 }
 0x98e   :  { %v1480_v62 = vadd.f32 %v1467_v59, %v3045_v56 }
 0x98f   :  { %v1484_v1 = vpack.c.bf16 %v1482_v23, %v1481_v0 }
 0x990   :  { %v1483_v30 = vpack.c.bf16 %v1480_v62, %v1479_v28 }
 0x992   :  { %2339 = vmatprep.mubr.bf16.mxu0 %v1483_v30 }
 0x993   :  { %2340 = vmatmul.mubr.bf16.vlgmr.msra.gmra.mrb[36].mxu0 %v1484_v1 }
 0x994   :  { %2367 = vmatprep.mubr.msk.bf16.mxu0 %vm2727_vm10, %v2726_v60 }
 0xa66   :  { %v2341_v5 = vpop.f32.mrb[36].mxu0 }
 0xa67   :  { %v1598_v4 = vadd.f32 %v2341_v5, %v1999_v57  ;;  %v1589_v19 = vpop.f32.mrb[37].mxu0 }
 0xa68   :  { %v1590_v55 = vadd.f32 %v1999_v57, %v1589_v19  ;;  %v2342_v20 = vpop.f32.mrb[38].mxu0 }
 0xa69   :  { %v1601_v56 = vadd.f32 %v2342_v20, %v1999_v57  ;;  %v1592_v25 = vpop.f32.mrb[39].mxu0  ;;  %v1606_v14 = vmax.f32 %v1598_v4, 0.0 }
 0xa6a   :  { %v1593_v6 = vadd.f32 %v1999_v57, %v1592_v25  ;;  %v1604_v18 = vmax.f32 %v1590_v55, 0.0 }
 0xa6b   :  { %v1607_v15 = vmax.f32 %v1601_v56, 0.0 }
 0xa6c   :  { %v1605_v21 = vmax.f32 %v1593_v6, 0.0 }
 0xa6d   :  { %v1609_v22 = vpack.c.bf16 %v1607_v15, %v1606_v14 }
 0xa6e   :  { %v1608_v29 = vpack.c.bf16 %v1605_v21, %v1604_v18 }
 0xa70   :  { %2359 = vmatprep.mubr.bf16.mxu1 %v1608_v29 }
 0xa71   :  { %2360 = vmatmul.mubr.bf16.vlgmr.msra.gmra.mrb[40].mxu1 %v1609_v22 }
 0xa72   :  { %2387 = vmatprep.mubr.msk.bf16.mxu1 %vm2727_vm10, %v2726_v60  ;;  %2372 = vmatpush3.bf16.msra.mxu1 %v2514_v63 }
 0xa73   :  { %2373 = vmatprep.subr.bf16.mxu1 %v2726_v60 }
 0xa76   :  { %2374 = vmatpush3.bf16.msra.mxu1 %v2515_v61 }
 0xa77   :  { %2375 = vmatprep.subr.bf16.mxu1 %v2726_v60 }
 0xa7a   :  { %2376 = vmatpush3.bf16.msra.mxu1 %v2516_v12 }
 0xa7b   :  { %2377 = vmatprep.subr.bf16.mxu1 %v2726_v60 }
 0xa7e   :  { %2378 = vmatpush3.bf16.msra.mxu1 %v2517_v24 }
 0xa7f   :  { %2379 = vmatprep.subr.bf16.mxu1 %v2726_v60 }
 0xa82   :  { %2380 = vmatpush3.bf16.msra.mxu1 %v2518_v13 }
 0xa83   :  { %2381 = vmatprep.subr.bf16.mxu1 %v2726_v60 }
 0xa86   :  { %2382 = vmatpush3.bf16.msra.mxu1 %v2519_v26 }
 0xa87   :  { %2383 = vmatprep.subr.bf16.mxu1 %v2726_v60 }
 0xa8a   :  { %2384 = vmatpush3.bf16.msra.mxu1 %v2520_v8 }
 0xa8b   :  { %2385 = vmatprep.subr.bf16.mxu1 %v2726_v60 }
 0xa8e   :  { %2386 = vmatpush3.bf16.msra.mxu1 %v2521_v16 }
 0xb44   :  { %v2361_v32 = vpop.f32.mrb[40].mxu1 }
 0xb45   :  { %v1723_v9 = vadd.f32 %v2361_v32, %v2008_v27  ;;  %v1714_v33 = vpop.f32.mrb[41].mxu1 }
 0xb46   :  { %v1715_v35 = vadd.f32 %v2008_v27, %v1714_v33  ;;  %v2362_v31 = vpop.f32.mrb[42].mxu1 }
 0xb47   :  { %v1726_v36 = vadd.f32 %v2362_v31, %v2008_v27  ;;  %v1717_v37 = vpop.f32.mrb[43].mxu1  ;;  %v1731_v7 = vadd.f32 %v1723_v9, %v1723_v9 }
 0xb48   :  { %v1718_v38 = vadd.f32 %v2008_v27, %v1717_v37  ;;  %v1729_v54 = vadd.f32 %v1715_v35, %v1715_v35 }
 0xb49   :  { %v1732_v39 = vadd.f32 %v1726_v36, %v1726_v36 }
 0xb4a   :  { %v1730_v10 = vadd.f32 %v1718_v38, %v1718_v38 }
 0xb4b   :  { %v1735_v40 = vpack.c.bf16 %v1732_v39, %v1731_v7 }
 0xb4c   :  { %v1734_v43 = vpack.c.bf16 %v1730_v10, %v1729_v54 }
 0xb4e   :  { %2364 = vmatpush3.bf16.msra.mxu0 %v1734_v43 }
 0xb4f   :  { %2365 = vmatprep.subr.bf16.mxu0 %v2726_v60 }
 0xb52   :  { %2366 = vmatpush3.bf16.msra.mxu0 %v1735_v40 }
 0xb55   :  { %2368 = vmatmul.mubr.msk.bf16.vlgmr.msra.gmra.mrb[40].mxu0 %vm511_vm0, %v1733_v11 }
 0xc28   :  { %v1773_v41 = vpop.f32.mrb[40].mxu0 }
 0xc29   :  { %v1779_v58 = vpack.c.bf16 %v1773_v41, %v1773_v41  ;;  %v2369_v42 = vpop.f32.mrb[41].mxu0 }
 0xc2a   :  { %v1776_v44 = vpop.f32.mrb[42].mxu0 }
 0xc2b   :  { %v2370_v47 = vpop.f32.mrb[43].mxu0  ;;  %2388 = vmatmul.mubr.bf16.vlgmr.msra.gmra.mrb[44].mxu1 %v1779_v58 }
 0xcfe   :  { %v1883_v34 = vpop.f32.mrb[44].mxu1 }
 0xcff   :  { %v1884_v46 = vadd.f32 %v2018_v45, %v1883_v34  ;;  %v2389_v48 = vpop.f32.mrb[45].mxu1 }
 0xd00   :  { %v1886_v49 = vpop.f32.mrb[46].mxu1 }
 0xd01   :  { %1889 = vst [vmem:[#allocation14] sm:$0xff] %v1884_v46  ;;  %v2390_v50 = vpop.f32.mrb[47].mxu1 }
 0xd02   :  { %2691 = shalt.err (!%p2688_p4)
}
 0xd03   :  { %s2692_s9 = scalar_lea.hbm %s3140_s10, 128 }
 0xd04   :  { %p2693_p5 = scmp.ne.s32.totalorder %s3140_s10, %s2692_s9  ;;  %p2696_p6 = scmp.lt.u32.totalorder %s2692_s9, %s3140_s10 }
 0xd06   :  { %p2698_p7 = pnand %p2696_p6, %p2693_p5 }
 0xd08   :  { %2701 = shalt.err (!%p2698_p7)
}
 0xd09   :  { %1899 = dma.vmem_to_hbm [thread:$0]  %s1897_s5, 128, %s3140_s10, [#allocation4]  }
 0xd0a   :  { %2710 = dma.done.wait [#allocation4], 128  }
 0xd0b   :  { %2711 = vsyncadd [#allocation4], 4294967168 }
 0xd0c   :  { %1903 = vsyncpa [#allocation3], 1 }
 0xd0d   :  { %1904 = vsyncpa [#allocation6], 1 }
 0xd0e   :  { %1905 = vsyncpa [#allocation9], 1 }
 0xd0f   :  { %1906 = vsyncpa [#allocation12], 1 }
 0xd10   :  { %1907 = vsyncpa [#allocation4], 1 }

</bundles_post_ra>
